<compile_context>
chip_gen: v7x
topology: tpu7x:2x2x1
jax: 0.10.0
libtpu: 0.0.40
codegen_flags: <defaults>
</compile_context>

<pallas_src>
import functools

import jax
import jax.numpy as jnp
from jax.experimental import pallas as pl
from jax.experimental.pallas import tpu as pltpu

EPS = 1e-5  # nn.LayerNorm default eps


# ---------------------------------------------------------------- helpers ----
def _layernorm(x, gamma, beta):
    x = x.astype(jnp.float32)
    mu = jnp.mean(x, axis=-1, keepdims=True)
    var = jnp.mean((x - mu) ** 2, axis=-1, keepdims=True)
    return (x - mu) * jax.lax.rsqrt(var + EPS) * gamma + beta


def _erf_approx(x):
    """Abramowitz & Stegun 7.1.26 rational approximation; |err| < 1.5e-7.

    Built only from exp / mul / add / div / where so it always lowers in Mosaic.
    """
    p = 0.3275911
    a1, a2, a3, a4, a5 = (0.254829592, -0.284496736, 1.421413741,
                          -1.453152027, 1.061405429)
    z = jnp.abs(x)
    t = 1.0 / (1.0 + p * z)
    poly = t * (a1 + t * (a2 + t * (a3 + t * (a4 + t * a5))))
    e = 1.0 - poly * jnp.exp(-z * z)
    return jnp.where(x >= 0, e, -e)


def _gelu_exact(x):
    """Exact (erf-form) GELU matching nn.GELU() defaults."""
    return 0.5 * x * (1.0 + _erf_approx(x * 0.7071067811865476))


# ----------------------------------------------------------------- kernel ----
def transformer_kernel(
    x_ref,
    ag_ref, ab_ref, wqkv_ref, wo_ref, bo_ref,       # attention params
    fg_ref, fb_ref, w1_ref, b1_ref, w2_ref, b2_ref,  # feed-forward params
    ng_ref, nb_ref,                                  # final LayerNorm
    o_ref,
    h_ref,                                           # VMEM: residual stream
    *, heads, dim_head, compute_dtype,
):
    """One grid step = one (batch block, layer).  Layer axis is innermost."""
    l = pl.program_id(1)
    n_layers = pl.num_programs(1)
    f32 = jnp.float32
    dh = dim_head
    inner = heads * dh
    tb = h_ref.shape[0]  # batch elements per block (static)

    # Initialize the carried residual stream from HBM input on the first layer.
    @pl.when(l == 0)
    def _():
        h_ref[...] = x_ref[...].astype(f32)

    # Per-layer parameters (weights already bf16; scale folded into Q columns).
    wqkv = wqkv_ref[0]              # (D, 3*inner)       bf16
    wo = wo_ref[0]                  # (heads, dh, D)     bf16
    w1 = w1_ref[0]                  # (D, mlp)           bf16
    w2 = w2_ref[0]                  # (mlp, D)           bf16
    ag = ag_ref[0, 0]; ab = ab_ref[0, 0]
    fg = fg_ref[0, 0]; fb = fb_ref[0, 0]
    bo = bo_ref[0, 0]; b1 = b1_ref[0, 0]; b2 = b2_ref[0, 0]

    for bi in range(tb):            # static unroll over the batch block
        x = h_ref[bi]               # (N, D) f32 residual stream

        # -------------- pre-norm multi-head attention + residual --------------
        xn = _layernorm(x, ag, ab).astype(compute_dtype)                # (N, D)
        # Fused, lane-dense QKV projection: f32 accumulate, single bf16 cast.
        qkv = jnp.dot(xn, wqkv,
                      preferred_element_type=f32).astype(compute_dtype)  # (N, 3*inner)

        y = jnp.zeros_like(x)       # (N, D) f32 — head-reduced attention output
        for h in range(heads):
            qh = qkv[:, h * dh:(h + 1) * dh]                    # (N, dh) bf16
            kh = qkv[:, inner + h * dh:inner + (h + 1) * dh]
            vh = qkv[:, 2 * inner + h * dh:2 * inner + (h + 1) * dh]
            # scale already folded into wq → plain QK^T
            dots = jnp.einsum('nd,md->nm', qh, kh,
                              preferred_element_type=f32)        # (N, N) f32
            m = jnp.max(dots, axis=-1, keepdims=True)
            p = jnp.exp(dots - m)
            inv_l = pl.reciprocal(jnp.sum(p, axis=-1, keepdims=True), approx=True)
            # PV matmul, then apply 1/l to the small (N, dh) result.
            oh = jnp.dot(p.astype(compute_dtype), vh,
                         preferred_element_type=f32) * inv_l     # (N, dh) f32
            # Output projection fused with the head reduction (f32 accumulate).
            y = y + jnp.dot(oh.astype(compute_dtype), wo[h],
                            preferred_element_type=f32)          # (N, D)
        x = x + y + bo              # residual (un-normed x) + output-proj bias

        # -------------- pre-norm MLP (Linear -> GELU -> Linear) + residual ----
        xn2 = _layernorm(x, fg, fb).astype(compute_dtype)
        a = jnp.dot(xn2, w1, preferred_element_type=f32) + b1
        a = _gelu_exact(a)          # exact-erf GELU (nn.GELU default)
        x = x + jnp.dot(a.astype(compute_dtype), w2,
                        preferred_element_type=f32) + b2

        h_ref[bi] = x               # carry to next layer

        # -------------- final LayerNorm, single HBM store per batch block -----
        @pl.when(l == n_layers - 1)
        def _():
            o_ref[bi] = _layernorm(x, ng_ref[0], nb_ref[0]).astype(o_ref.dtype)


# ---------------------------------------------------------------- wrapper ----
def transformer_forward(x, packed, *, heads, dim_head, batch_blocks=2,
                        compute_dtype=jnp.bfloat16,
                        vmem_limit_bytes=48 * 1024 * 1024):
    B, N, D = x.shape
    depth = packed["w_qkv"].shape[0]
    mlp = packed["w1"].shape[-1]
    inner = heads * dim_head

    # v7x: keep >= 2 batch blocks so the "parallel" axis shards across both TCs.
    # v5e/v6e: larger blocks (fewer weight re-streams) are fine too.
    batch_blocks = max(1, min(batch_blocks, B))
    if B % batch_blocks != 0:
        batch_blocks = B
    tb = B // batch_blocks

    kernel = functools.partial(transformer_kernel, heads=heads, dim_head=dim_head,
                               compute_dtype=compute_dtype)

    def vec_spec(d):                                   # (depth, 1, d) params
        return pl.BlockSpec((1, 1, d), lambda b, l: (l, 0, 0))

    def mat_spec(*dims):                               # (depth, *dims) params
        zeros = (0,) * len(dims)
        return pl.BlockSpec((1,) + dims, lambda b, l, _z=zeros: (l,) + _z)

    x_spec = pl.BlockSpec((tb, N, D), lambda b, l: (b, 0, 0))
    norm_spec = pl.BlockSpec((1, D), lambda b, l: (0, 0))

    in_specs = [
        x_spec,
        vec_spec(D), vec_spec(D),                      # attn LayerNorm
        mat_spec(D, 3 * inner),                        # fused w_qkv (bf16)
        mat_spec(heads, dim_head, D),                  # wo per head (bf16)
        vec_spec(D),                                   # bo
        vec_spec(D), vec_spec(D),                      # ff LayerNorm
        mat_spec(D, mlp), vec_spec(mlp),               # w1, b1
        mat_spec(mlp, D), vec_spec(D),                 # w2, b2
        norm_spec, norm_spec,                          # final LayerNorm
    ]

    # Advisory cost estimate for the XLA scheduler (bf16 weights, streamed once
    # per batch block).
    flops = B * depth * (2 * N * D * 3 * inner          # fused qkv projection
                         + 4 * heads * N * N * dim_head  # scores + PV
                         + 2 * N * inner * D             # output projection
                         + 4 * N * D * mlp)              # MLP
    transcendentals = B * depth * (heads * N * (N + 1) + N * mlp) + B * N
    weight_bytes = depth * (2 * (D * 3 * inner + inner * D + 2 * D * mlp)
                            + 4 * (6 * D + mlp))
    bytes_accessed = 2 * B * N * D * 4 + batch_blocks * weight_bytes + 2 * D * 4

    return pl.pallas_call(
        kernel,
        out_shape=jax.ShapeDtypeStruct((B, N, D), x.dtype),
        grid=(batch_blocks, depth),
        in_specs=in_specs,
        out_specs=pl.BlockSpec((tb, N, D), lambda b, l: (b, 0, 0)),
        scratch_shapes=[pltpu.VMEM((tb, N, D), jnp.float32)],
        compiler_params=pltpu.CompilerParams(
            dimension_semantics=("parallel", "arbitrary"),
            vmem_limit_bytes=vmem_limit_bytes),
        cost_estimate=pl.CostEstimate(flops=int(flops),
                                      transcendentals=int(transcendentals),
                                      bytes_accessed=int(bytes_accessed)),
    )(x,
      packed["attn_g"], packed["attn_b"],
      packed["w_qkv"], packed["wo"], packed["bo"],
      packed["ff_g"], packed["ff_b"],
      packed["w1"], packed["b1"], packed["w2"], packed["b2"],
      packed["norm_g"], packed["norm_b"])


# ------------------------------------------------------------- param prep ----
def init_params(key, *, dim, depth, heads, dim_head, mlp_dim):
    """PyTorch-equivalent layout: Linear weights stored as (in, out) (= W_torch.T)."""
    inner = heads * dim_head
    layers = []
    for _ in range(depth):
        key, k1, k2, k3, k4 = jax.random.split(key, 5)
        layers.append({
            "attn": {
                "ln_g": jnp.ones((dim,), jnp.float32),
                "ln_b": jnp.zeros((dim,), jnp.float32),
                "w_qkv": 0.05 * jax.random.normal(k1, (dim, 3 * inner), jnp.float32),
                "w_out": 0.05 * jax.random.normal(k2, (inner, dim), jnp.float32),
                "b_out": jnp.zeros((dim,), jnp.float32),
            },
            "ff": {
                "ln_g": jnp.ones((dim,), jnp.float32),
                "ln_b": jnp.zeros((dim,), jnp.float32),
                "w1": 0.05 * jax.random.normal(k3, (dim, mlp_dim), jnp.float32),
                "b1": jnp.zeros((mlp_dim,), jnp.float32),
                "w2": 0.05 * jax.random.normal(k4, (mlp_dim, dim), jnp.float32),
                "b2": jnp.zeros((dim,), jnp.float32),
            },
        })
    return {"layers": layers,
            "final_norm": {"g": jnp.ones((dim,), jnp.float32),
                           "b": jnp.zeros((dim,), jnp.float32)}}


def pack_params(params, *, heads, dim_head, compute_dtype=jnp.bfloat16):
    """Host-side, one-time packing:
       * stack per-layer params on a leading depth axis,
       * keep w_qkv FUSED as (D, 3*inner) with 1/sqrt(dim_head) folded into Q,
       * reshape w_out to per-head (heads, dh, D) so the head reduction fuses
         into the output-projection accumulation,
       * cast all matmul weights to bf16 (halves HBM traffic / VMEM footprint);
         LayerNorm params and biases stay f32."""
    dh = dim_head
    inner = heads * dh
    scale = dh ** (-0.5)
    layers = params["layers"]

    def stack(fn):
        return jnp.stack([fn(l) for l in layers], axis=0)

    def qkv_scaled(l):
        w = l["attn"]["w_qkv"]                                   # (D, 3*inner)
        return jnp.concatenate([w[:, :inner] * scale, w[:, inner:]], axis=-1)

    return {
        "attn_g": stack(lambda l: l["attn"]["ln_g"][None]),      # (depth, 1, D) f32
        "attn_b": stack(lambda l: l["attn"]["ln_b"][None]),
        "w_qkv": stack(qkv_scaled).astype(compute_dtype),        # (depth, D, 3*inner)
        "wo": stack(lambda l: l["attn"]["w_out"]
                    .reshape(heads, dh, -1)).astype(compute_dtype),  # (depth, H, dh, D)
        "bo": stack(lambda l: l["attn"]["b_out"][None]),
        "ff_g": stack(lambda l: l["ff"]["ln_g"][None]),
        "ff_b": stack(lambda l: l["ff"]["ln_b"][None]),
        "w1": stack(lambda l: l["ff"]["w1"]).astype(compute_dtype),  # (depth, D, mlp)
        "b1": stack(lambda l: l["ff"]["b1"][None]),
        "w2": stack(lambda l: l["ff"]["w2"]).astype(compute_dtype),  # (depth, mlp, D)
        "b2": stack(lambda l: l["ff"]["b2"][None]),
        "norm_g": params["final_norm"]["g"][None],               # (1, D) f32
        "norm_b": params["final_norm"]["b"][None],
    }


# --------------------------------------------------------------- reference ---
def reference_forward(x, params, *, heads, dim_head):
    """Pure-JAX f32 reference matching the PyTorch module (dropout = identity)."""
    dh = dim_head
    inner = heads * dh
    scale = dh ** (-0.5)
    B, N, D = x.shape

    def ln(v, g, b):
        mu = v.mean(-1, keepdims=True)
        var = ((v - mu) ** 2).mean(-1, keepdims=True)
        return (v - mu) / jnp.sqrt(var + EPS) * g + b

    for layer in params["layers"]:
        a = layer["attn"]
        xn = ln(x, a["ln_g"], a["ln_b"])
        qkv = xn @ a["w_qkv"]
        q, k, v = jnp.split(qkv, 3, axis=-1)

        def to_heads(t):
            return t.reshape(B, N, heads, dh).transpose(0, 2, 1, 3)

        q, k, v = map(to_heads, (q, k, v))
        dots = jnp.einsum('bhnd,bhmd->bhnm', q, k) * scale
        attn = jax.nn.softmax(dots, axis=-1)
        out = jnp.einsum('bhnm,bhmd->bhnd', attn, v)
        out = out.transpose(0, 2, 1, 3).reshape(B, N, inner)
        x = out @ a["w_out"] + a["b_out"] + x

        f = layer["ff"]
        xn2 = ln(x, f["ln_g"], f["ln_b"])
        h = jax.nn.gelu(xn2 @ f["w1"] + f["b1"], approximate=False)
        x = h @ f["w2"] + f["b2"] + x

    return ln(x, params["final_norm"]["g"], params["final_norm"]["b"])


# ------------------------------------------------------------------- main ----
if __name__ == "__main__":
    B, N = 2, 8
    dim, depth, heads, dim_head, mlp_dim = 32, 2, 4, 8, 64

    key = jax.random.PRNGKey(0)
    kx, kp = jax.random.split(key)
    x = jax.random.normal(kx, (B, N, dim), jnp.float32)
    params = init_params(kp, dim=dim, depth=depth, heads=heads,
                         dim_head=dim_head, mlp_dim=mlp_dim)
    packed = pack_params(params, heads=heads, dim_head=dim_head)

    fwd = jax.jit(functools.partial(transformer_forward, heads=heads,
                                    dim_head=dim_head, batch_blocks=2,
                                    compute_dtype=jnp.bfloat16))
    out = jax.block_until_ready(fwd(x, packed))
    assert out.shape == (B, N, dim)
    assert bool(jnp.isfinite(out).all())

    ref = reference_forward(x, params, heads=heads, dim_head=dim_head)
    err = float(jnp.max(jnp.abs(out - ref)))
    assert err < 0.1, f"max abs err vs f32 reference too large: {err}"
    print("KERNEL_OK")
</pallas_src>

<mosaic_0001>
module attributes {stable_mosaic.version = 11 : i64} {
  func.func @transformer_kernel(%arg0: i32, %arg1: i32, %arg2: memref<1x8x32xf32, #tpu.memory_space<vmem>>, %arg3: memref<1x1x32xf32, #tpu.memory_space<vmem>>, %arg4: memref<1x1x32xf32, #tpu.memory_space<vmem>>, %arg5: memref<1x32x96xbf16, #tpu.memory_space<vmem>>, %arg6: memref<1x4x8x32xbf16, #tpu.memory_space<vmem>>, %arg7: memref<1x1x32xf32, #tpu.memory_space<vmem>>, %arg8: memref<1x1x32xf32, #tpu.memory_space<vmem>>, %arg9: memref<1x1x32xf32, #tpu.memory_space<vmem>>, %arg10: memref<1x32x64xbf16, #tpu.memory_space<vmem>>, %arg11: memref<1x1x64xf32, #tpu.memory_space<vmem>>, %arg12: memref<1x64x32xbf16, #tpu.memory_space<vmem>>, %arg13: memref<1x1x32xf32, #tpu.memory_space<vmem>>, %arg14: memref<1x32xf32, #tpu.memory_space<vmem>>, %arg15: memref<1x32xf32, #tpu.memory_space<vmem>>, %arg16: memref<1x8x32xf32, #tpu.memory_space<vmem>>, %arg17: memref<1x8x32xf32, #tpu.memory_space<vmem>>) attributes {dimension_semantics = [#tpu.dimension_semantics<parallel>, #tpu.dimension_semantics<arbitrary>], iteration_bounds = array<i64: 2, 2>, scalar_prefetch = 0 : i64, scratch_operands = 1 : i64, tpu.core_type = #tpu.core_type<tc>, window_params = [{transform_indices = @transform_0, window_bounds = array<i64: 1, 8, 32>}, {transform_indices = @transform_1, window_bounds = array<i64: 1, 1, 32>}, {transform_indices = @transform_2, window_bounds = array<i64: 1, 1, 32>}, {transform_indices = @transform_3, window_bounds = array<i64: 1, 32, 96>}, {transform_indices = @transform_4, window_bounds = array<i64: 1, 4, 8, 32>}, {transform_indices = @transform_5, window_bounds = array<i64: 1, 1, 32>}, {transform_indices = @transform_6, window_bounds = array<i64: 1, 1, 32>}, {transform_indices = @transform_7, window_bounds = array<i64: 1, 1, 32>}, {transform_indices = @transform_8, window_bounds = array<i64: 1, 32, 64>}, {transform_indices = @transform_9, window_bounds = array<i64: 1, 1, 64>}, {transform_indices = @transform_10, window_bounds = array<i64: 1, 64, 32>}, {transform_indices = @transform_11, window_bounds = array<i64: 1, 1, 32>}, {pipeline_mode = #tpu.pipeline_mode<synchronous>, transform_indices = @transform_12, window_bounds = array<i64: 1, 32>}, {pipeline_mode = #tpu.pipeline_mode<synchronous>, transform_indices = @transform_13, window_bounds = array<i64: 1, 32>}, {transform_indices = @transform_14, window_bounds = array<i64: 1, 8, 32>}]} {
    %c0_i32 = arith.constant 0 : i32
    %0 = arith.cmpi eq, %arg1, %c0_i32 : i32
    %1 = arith.extui %0 : i1 to i32
    %c0_i32_0 = arith.constant 0 : i32
    %2 = arith.cmpi ne, %1, %c0_i32_0 : i32
    scf.if %2 {
      %c0_89 = arith.constant 0 : index
      %c0_90 = arith.constant 0 : index
      %c0_91 = arith.constant 0 : index
      %224 = vector.load %arg2[%c0_89, %c0_90, %c0_91] : memref<1x8x32xf32, #tpu.memory_space<vmem>>, vector<1x8x32xf32>
      %c0_92 = arith.constant 0 : index
      %c0_93 = arith.constant 0 : index
      %c0_94 = arith.constant 0 : index
      %225 = vector.load %arg17[%c0_92, %c0_93, %c0_94] : memref<1x8x32xf32, #tpu.memory_space<vmem>>, vector<1x8x32xf32>
      tpu.vector_store %arg17[%c0_92, %c0_93, %c0_94], %224 {strides = array<i32>} : memref<1x8x32xf32, #tpu.memory_space<vmem>>, vector<1x8x32xf32>,
    } else {
    }
    %c0 = arith.constant 0 : index
    %c0_1 = arith.constant 0 : index
    %c0_2 = arith.constant 0 : index
    %3 = vector.load %arg5[%c0, %c0_1, %c0_2] : memref<1x32x96xbf16, #tpu.memory_space<vmem>>, vector<1x32x96xbf16>
    %4 = vector.shape_cast %3 : vector<1x32x96xbf16> to vector<32x96xbf16>
    %c0_3 = arith.constant 0 : index
    %c0_4 = arith.constant 0 : index
    %c0_5 = arith.constant 0 : index
    %c0_6 = arith.constant 0 : index
    %5 = vector.load %arg6[%c0_3, %c0_4, %c0_5, %c0_6] : memref<1x4x8x32xbf16, #tpu.memory_space<vmem>>, vector<1x4x8x32xbf16>
    %6 = vector.shape_cast %5 : vector<1x4x8x32xbf16> to vector<4x8x32xbf16>
    %c0_7 = arith.constant 0 : index
    %c0_8 = arith.constant 0 : index
    %c0_9 = arith.constant 0 : index
    %7 = vector.load %arg10[%c0_7, %c0_8, %c0_9] : memref<1x32x64xbf16, #tpu.memory_space<vmem>>, vector<1x32x64xbf16>
    %8 = vector.shape_cast %7 : vector<1x32x64xbf16> to vector<32x64xbf16>
    %c0_10 = arith.constant 0 : index
    %c0_11 = arith.constant 0 : index
    %c0_12 = arith.constant 0 : index
    %9 = vector.load %arg12[%c0_10, %c0_11, %c0_12] : memref<1x64x32xbf16, #tpu.memory_space<vmem>>, vector<1x64x32xbf16>
    %10 = vector.shape_cast %9 : vector<1x64x32xbf16> to vector<64x32xbf16>
    %c0_13 = arith.constant 0 : index
    %c0_14 = arith.constant 0 : index
    %c0_15 = arith.constant 0 : index
    %11 = vector.load %arg3[%c0_13, %c0_14, %c0_15] : memref<1x1x32xf32, #tpu.memory_space<vmem>>, vector<1x1x32xf32>
    %12 = vector.shape_cast %11 : vector<1x1x32xf32> to vector<32xf32>
    %c0_16 = arith.constant 0 : index
    %c0_17 = arith.constant 0 : index
    %c0_18 = arith.constant 0 : index
    %13 = vector.load %arg4[%c0_16, %c0_17, %c0_18] : memref<1x1x32xf32, #tpu.memory_space<vmem>>, vector<1x1x32xf32>
    %14 = vector.shape_cast %13 : vector<1x1x32xf32> to vector<32xf32>
    %c0_19 = arith.constant 0 : index
    %c0_20 = arith.constant 0 : index
    %c0_21 = arith.constant 0 : index
    %15 = vector.load %arg8[%c0_19, %c0_20, %c0_21] : memref<1x1x32xf32, #tpu.memory_space<vmem>>, vector<1x1x32xf32>
    %16 = vector.shape_cast %15 : vector<1x1x32xf32> to vector<32xf32>
    %c0_22 = arith.constant 0 : index
    %c0_23 = arith.constant 0 : index
    %c0_24 = arith.constant 0 : index
    %17 = vector.load %arg9[%c0_22, %c0_23, %c0_24] : memref<1x1x32xf32, #tpu.memory_space<vmem>>, vector<1x1x32xf32>
    %18 = vector.shape_cast %17 : vector<1x1x32xf32> to vector<32xf32>
    %c0_25 = arith.constant 0 : index
    %c0_26 = arith.constant 0 : index
    %c0_27 = arith.constant 0 : index
    %19 = vector.load %arg7[%c0_25, %c0_26, %c0_27] : memref<1x1x32xf32, #tpu.memory_space<vmem>>, vector<1x1x32xf32>
    %20 = vector.shape_cast %19 : vector<1x1x32xf32> to vector<32xf32>
    %c0_28 = arith.constant 0 : index
    %c0_29 = arith.constant 0 : index
    %c0_30 = arith.constant 0 : index
    %21 = vector.load %arg11[%c0_28, %c0_29, %c0_30] : memref<1x1x64xf32, #tpu.memory_space<vmem>>, vector<1x1x64xf32>
    %22 = vector.shape_cast %21 : vector<1x1x64xf32> to vector<64xf32>
    %c0_31 = arith.constant 0 : index
    %c0_32 = arith.constant 0 : index
    %c0_33 = arith.constant 0 : index
    %23 = vector.load %arg13[%c0_31, %c0_32, %c0_33] : memref<1x1x32xf32, #tpu.memory_space<vmem>>, vector<1x1x32xf32>
    %24 = vector.shape_cast %23 : vector<1x1x32xf32> to vector<32xf32>
    %c0_34 = arith.constant 0 : index
    %c0_35 = arith.constant 0 : index
    %c0_36 = arith.constant 0 : index
    %25 = vector.load %arg17[%c0_34, %c0_35, %c0_36] : memref<1x8x32xf32, #tpu.memory_space<vmem>>, vector<1x8x32xf32>
    %26 = vector.shape_cast %25 : vector<1x8x32xf32> to vector<8x32xf32>
    %cst = arith.constant dense<0.000000e+00> : vector<8xf32>
    %27 = vector.multi_reduction <add>, %26, %cst [1] : vector<8x32xf32> to vector<8xf32>
    %28 = vector.shape_cast %27 : vector<8xf32> to vector<8x1xf32>
    %cst_37 = arith.constant 3.200000e+01 : f32
    %29 = vector.broadcast %cst_37 : f32 to vector<8x1xf32>
    %30 = arith.divf %28, %29 : vector<8x1xf32>
    %31 = vector.broadcast %30 : vector<8x1xf32> to vector<8x32xf32>
    %32 = arith.subf %26, %31 : vector<8x32xf32>
    %33 = arith.mulf %32, %32 : vector<8x32xf32>
    %cst_38 = arith.constant dense<0.000000e+00> : vector<8xf32>
    %34 = vector.multi_reduction <add>, %33, %cst_38 [1] : vector<8x32xf32> to vector<8xf32>
    %35 = vector.shape_cast %34 : vector<8xf32> to vector<8x1xf32>
    %cst_39 = arith.constant 3.200000e+01 : f32
    %36 = vector.broadcast %cst_39 : f32 to vector<8x1xf32>
    %37 = arith.divf %35, %36 : vector<8x1xf32>
    %38 = vector.broadcast %30 : vector<8x1xf32> to vector<8x32xf32>
    %39 = arith.subf %26, %38 : vector<8x32xf32>
    %cst_40 = arith.constant 9.99999974E-6 : f32
    %40 = vector.broadcast %cst_40 : f32 to vector<8x1xf32>
    %41 = arith.addf %37, %40 : vector<8x1xf32>
    %42 = math.rsqrt %41 : vector<8x1xf32>
    %43 = vector.broadcast %42 : vector<8x1xf32> to vector<8x32xf32>
    %44 = arith.mulf %39, %43 : vector<8x32xf32>
    %45 = vector.shape_cast %12 : vector<32xf32> to vector<1x32xf32>
    %46 = vector.broadcast %45 : vector<1x32xf32> to vector<8x32xf32>
    %47 = arith.mulf %44, %46 : vector<8x32xf32>
    %48 = vector.shape_cast %14 : vector<32xf32> to vector<1x32xf32>
    %49 = vector.broadcast %48 : vector<1x32xf32> to vector<8x32xf32>
    %50 = arith.addf %47, %49 : vector<8x32xf32>
    %51 = arith.truncf %50 : vector<8x32xf32> to vector<8x32xbf16>
    %cst_41 = arith.constant dense<0.000000e+00> : vector<8x96xf32>
    %52 = tpu.matmul %51, %4, %cst_41 {dimension_numbers = #tpu.dot_dimension_numbers<[1], [0], [0], [1], [0, 0, 1, 1], [], []>} : vector<8x32xbf16>, vector<32x96xbf16>, vector<8x96xf32> -> vector<8x96xf32>
    %53 = arith.truncf %52 : vector<8x96xf32> to vector<8x96xbf16>
    %cst_42 = arith.constant 0.000000e+00 : f32
    %54 = vector.broadcast %cst_42 : f32 to vector<8x32xf32>
    %55 = vector.extract_strided_slice %53 {offsets = [0, 0], sizes = [8, 8], strides = [1, 1]} : vector<8x96xbf16> to vector<8x8xbf16>
    %56 = vector.extract_strided_slice %53 {offsets = [0, 32], sizes = [8, 8], strides = [1, 1]} : vector<8x96xbf16> to vector<8x8xbf16>
    %57 = vector.extract_strided_slice %53 {offsets = [0, 64], sizes = [8, 8], strides = [1, 1]} : vector<8x96xbf16> to vector<8x8xbf16>
    "tpu.trace_start"() <{level = 10 : i32, message = "nd,md->nm"}> : () -> ()
    %cst_43 = arith.constant dense<0.000000e+00> : vector<8x8xf32>
    %58 = tpu.matmul %55, %56, %cst_43 {dimension_numbers = #tpu.dot_dimension_numbers<[1], [1], [0], [0], [0, 0, 1, 0], [], []>} : vector<8x8xbf16>, vector<8x8xbf16>, vector<8x8xf32> -> vector<8x8xf32>
    "tpu.trace_stop"() : () -> ()
    %cst_44 = arith.constant dense<0xFF800000> : vector<8xf32>
    %59 = vector.multi_reduction <maximumf>, %58, %cst_44 [1] : vector<8x8xf32> to vector<8xf32>
    %60 = vector.shape_cast %59 : vector<8xf32> to vector<8x1xf32>
    %61 = vector.broadcast %60 : vector<8x1xf32> to vector<8x8xf32>
    %62 = arith.subf %58, %61 : vector<8x8xf32>
    %63 = math.exp %62 : vector<8x8xf32>
    %cst_45 = arith.constant dense<0.000000e+00> : vector<8xf32>
    %64 = vector.multi_reduction <add>, %63, %cst_45 [1] : vector<8x8xf32> to vector<8xf32>
    %65 = vector.shape_cast %64 : vector<8xf32> to vector<8x1xf32>
    %66 = tpu.reciprocal %65 {approx = true} : vector<8x1xf32> -> vector<8x1xf32>
    %67 = arith.truncf %63 : vector<8x8xf32> to vector<8x8xbf16>
    %cst_46 = arith.constant dense<0.000000e+00> : vector<8x8xf32>
    %68 = tpu.matmul %67, %57, %cst_46 {dimension_numbers = #tpu.dot_dimension_numbers<[1], [0], [0], [1], [0, 0, 1, 1], [], []>} : vector<8x8xbf16>, vector<8x8xbf16>, vector<8x8xf32> -> vector<8x8xf32>
    %69 = vector.broadcast %66 : vector<8x1xf32> to vector<8x8xf32>
    %70 = arith.mulf %68, %69 : vector<8x8xf32>
    %71 = arith.truncf %70 : vector<8x8xf32> to vector<8x8xbf16>
    %72 = vector.extract_strided_slice %6 {offsets = [0, 0, 0], sizes = [1, 8, 32], strides = [1, 1, 1]} : vector<4x8x32xbf16> to vector<1x8x32xbf16>
    %73 = vector.shape_cast %72 : vector<1x8x32xbf16> to vector<8x32xbf16>
    %cst_47 = arith.constant dense<0.000000e+00> : vector<8x32xf32>
    %74 = tpu.matmul %71, %73, %cst_47 {dimension_numbers = #tpu.dot_dimension_numbers<[1], [0], [0], [1], [0, 0, 1, 1], [], []>} : vector<8x8xbf16>, vector<8x32xbf16>, vector<8x32xf32> -> vector<8x32xf32>
    %75 = arith.addf %54, %74 : vector<8x32xf32>
    %76 = vector.extract_strided_slice %53 {offsets = [0, 8], sizes = [8, 8], strides = [1, 1]} : vector<8x96xbf16> to vector<8x8xbf16>
    %77 = vector.extract_strided_slice %53 {offsets = [0, 40], sizes = [8, 8], strides = [1, 1]} : vector<8x96xbf16> to vector<8x8xbf16>
    %78 = vector.extract_strided_slice %53 {offsets = [0, 72], sizes = [8, 8], strides = [1, 1]} : vector<8x96xbf16> to vector<8x8xbf16>
    "tpu.trace_start"() <{level = 10 : i32, message = "nd,md->nm"}> : () -> ()
    %cst_48 = arith.constant dense<0.000000e+00> : vector<8x8xf32>
    %79 = tpu.matmul %76, %77, %cst_48 {dimension_numbers = #tpu.dot_dimension_numbers<[1], [1], [0], [0], [0, 0, 1, 0], [], []>} : vector<8x8xbf16>, vector<8x8xbf16>, vector<8x8xf32> -> vector<8x8xf32>
    "tpu.trace_stop"() : () -> ()
    %cst_49 = arith.constant dense<0xFF800000> : vector<8xf32>
    %80 = vector.multi_reduction <maximumf>, %79, %cst_49 [1] : vector<8x8xf32> to vector<8xf32>
    %81 = vector.shape_cast %80 : vector<8xf32> to vector<8x1xf32>
    %82 = vector.broadcast %81 : vector<8x1xf32> to vector<8x8xf32>
    %83 = arith.subf %79, %82 : vector<8x8xf32>
    %84 = math.exp %83 : vector<8x8xf32>
    %cst_50 = arith.constant dense<0.000000e+00> : vector<8xf32>
    %85 = vector.multi_reduction <add>, %84, %cst_50 [1] : vector<8x8xf32> to vector<8xf32>
    %86 = vector.shape_cast %85 : vector<8xf32> to vector<8x1xf32>
    %87 = tpu.reciprocal %86 {approx = true} : vector<8x1xf32> -> vector<8x1xf32>
    %88 = arith.truncf %84 : vector<8x8xf32> to vector<8x8xbf16>
    %cst_51 = arith.constant dense<0.000000e+00> : vector<8x8xf32>
    %89 = tpu.matmul %88, %78, %cst_51 {dimension_numbers = #tpu.dot_dimension_numbers<[1], [0], [0], [1], [0, 0, 1, 1], [], []>} : vector<8x8xbf16>, vector<8x8xbf16>, vector<8x8xf32> -> vector<8x8xf32>
    %90 = vector.broadcast %87 : vector<8x1xf32> to vector<8x8xf32>
    %91 = arith.mulf %89, %90 : vector<8x8xf32>
    %92 = arith.truncf %91 : vector<8x8xf32> to vector<8x8xbf16>
    %93 = vector.extract_strided_slice %6 {offsets = [1, 0, 0], sizes = [1, 8, 32], strides = [1, 1, 1]} : vector<4x8x32xbf16> to vector<1x8x32xbf16>
    %94 = vector.shape_cast %93 : vector<1x8x32xbf16> to vector<8x32xbf16>
    %cst_52 = arith.constant dense<0.000000e+00> : vector<8x32xf32>
    %95 = tpu.matmul %92, %94, %cst_52 {dimension_numbers = #tpu.dot_dimension_numbers<[1], [0], [0], [1], [0, 0, 1, 1], [], []>} : vector<8x8xbf16>, vector<8x32xbf16>, vector<8x32xf32> -> vector<8x32xf32>
    %96 = arith.addf %75, %95 : vector<8x32xf32>
    %97 = vector.extract_strided_slice %53 {offsets = [0, 16], sizes = [8, 8], strides = [1, 1]} : vector<8x96xbf16> to vector<8x8xbf16>
    %98 = vector.extract_strided_slice %53 {offsets = [0, 48], sizes = [8, 8], strides = [1, 1]} : vector<8x96xbf16> to vector<8x8xbf16>
    %99 = vector.extract_strided_slice %53 {offsets = [0, 80], sizes = [8, 8], strides = [1, 1]} : vector<8x96xbf16> to vector<8x8xbf16>
    "tpu.trace_start"() <{level = 10 : i32, message = "nd,md->nm"}> : () -> ()
    %cst_53 = arith.constant dense<0.000000e+00> : vector<8x8xf32>
    %100 = tpu.matmul %97, %98, %cst_53 {dimension_numbers = #tpu.dot_dimension_numbers<[1], [1], [0], [0], [0, 0, 1, 0], [], []>} : vector<8x8xbf16>, vector<8x8xbf16>, vector<8x8xf32> -> vector<8x8xf32>
    "tpu.trace_stop"() : () -> ()
    %cst_54 = arith.constant dense<0xFF800000> : vector<8xf32>
    %101 = vector.multi_reduction <maximumf>, %100, %cst_54 [1] : vector<8x8xf32> to vector<8xf32>
    %102 = vector.shape_cast %101 : vector<8xf32> to vector<8x1xf32>
    %103 = vector.broadcast %102 : vector<8x1xf32> to vector<8x8xf32>
    %104 = arith.subf %100, %103 : vector<8x8xf32>
    %105 = math.exp %104 : vector<8x8xf32>
    %cst_55 = arith.constant dense<0.000000e+00> : vector<8xf32>
    %106 = vector.multi_reduction <add>, %105, %cst_55 [1] : vector<8x8xf32> to vector<8xf32>
    %107 = vector.shape_cast %106 : vector<8xf32> to vector<8x1xf32>
    %108 = tpu.reciprocal %107 {approx = true} : vector<8x1xf32> -> vector<8x1xf32>
    %109 = arith.truncf %105 : vector<8x8xf32> to vector<8x8xbf16>
    %cst_56 = arith.constant dense<0.000000e+00> : vector<8x8xf32>
    %110 = tpu.matmul %109, %99, %cst_56 {dimension_numbers = #tpu.dot_dimension_numbers<[1], [0], [0], [1], [0, 0, 1, 1], [], []>} : vector<8x8xbf16>, vector<8x8xbf16>, vector<8x8xf32> -> vector<8x8xf32>
    %111 = vector.broadcast %108 : vector<8x1xf32> to vector<8x8xf32>
    %112 = arith.mulf %110, %111 : vector<8x8xf32>
    %113 = arith.truncf %112 : vector<8x8xf32> to vector<8x8xbf16>
    %114 = vector.extract_strided_slice %6 {offsets = [2, 0, 0], sizes = [1, 8, 32], strides = [1, 1, 1]} : vector<4x8x32xbf16> to vector<1x8x32xbf16>
    %115 = vector.shape_cast %114 : vector<1x8x32xbf16> to vector<8x32xbf16>
    %cst_57 = arith.constant dense<0.000000e+00> : vector<8x32xf32>
    %116 = tpu.matmul %113, %115, %cst_57 {dimension_numbers = #tpu.dot_dimension_numbers<[1], [0], [0], [1], [0, 0, 1, 1], [], []>} : vector<8x8xbf16>, vector<8x32xbf16>, vector<8x32xf32> -> vector<8x32xf32>
    %117 = arith.addf %96, %116 : vector<8x32xf32>
    %118 = vector.extract_strided_slice %53 {offsets = [0, 24], sizes = [8, 8], strides = [1, 1]} : vector<8x96xbf16> to vector<8x8xbf16>
    %119 = vector.extract_strided_slice %53 {offsets = [0, 56], sizes = [8, 8], strides = [1, 1]} : vector<8x96xbf16> to vector<8x8xbf16>
    %120 = vector.extract_strided_slice %53 {offsets = [0, 88], sizes = [8, 8], strides = [1, 1]} : vector<8x96xbf16> to vector<8x8xbf16>
    "tpu.trace_start"() <{level = 10 : i32, message = "nd,md->nm"}> : () -> ()
    %cst_58 = arith.constant dense<0.000000e+00> : vector<8x8xf32>
    %121 = tpu.matmul %118, %119, %cst_58 {dimension_numbers = #tpu.dot_dimension_numbers<[1], [1], [0], [0], [0, 0, 1, 0], [], []>} : vector<8x8xbf16>, vector<8x8xbf16>, vector<8x8xf32> -> vector<8x8xf32>
    "tpu.trace_stop"() : () -> ()
    %cst_59 = arith.constant dense<0xFF800000> : vector<8xf32>
    %122 = vector.multi_reduction <maximumf>, %121, %cst_59 [1] : vector<8x8xf32> to vector<8xf32>
    %123 = vector.shape_cast %122 : vector<8xf32> to vector<8x1xf32>
    %124 = vector.broadcast %123 : vector<8x1xf32> to vector<8x8xf32>
    %125 = arith.subf %121, %124 : vector<8x8xf32>
    %126 = math.exp %125 : vector<8x8xf32>
    %cst_60 = arith.constant dense<0.000000e+00> : vector<8xf32>
    %127 = vector.multi_reduction <add>, %126, %cst_60 [1] : vector<8x8xf32> to vector<8xf32>
    %128 = vector.shape_cast %127 : vector<8xf32> to vector<8x1xf32>
    %129 = tpu.reciprocal %128 {approx = true} : vector<8x1xf32> -> vector<8x1xf32>
    %130 = arith.truncf %126 : vector<8x8xf32> to vector<8x8xbf16>
    %cst_61 = arith.constant dense<0.000000e+00> : vector<8x8xf32>
    %131 = tpu.matmul %130, %120, %cst_61 {dimension_numbers = #tpu.dot_dimension_numbers<[1], [0], [0], [1], [0, 0, 1, 1], [], []>} : vector<8x8xbf16>, vector<8x8xbf16>, vector<8x8xf32> -> vector<8x8xf32>
    %132 = vector.broadcast %129 : vector<8x1xf32> to vector<8x8xf32>
    %133 = arith.mulf %131, %132 : vector<8x8xf32>
    %134 = arith.truncf %133 : vector<8x8xf32> to vector<8x8xbf16>
    %135 = vector.extract_strided_slice %6 {offsets = [3, 0, 0], sizes = [1, 8, 32], strides = [1, 1, 1]} : vector<4x8x32xbf16> to vector<1x8x32xbf16>
    %136 = vector.shape_cast %135 : vector<1x8x32xbf16> to vector<8x32xbf16>
    %cst_62 = arith.constant dense<0.000000e+00> : vector<8x32xf32>
    %137 = tpu.matmul %134, %136, %cst_62 {dimension_numbers = #tpu.dot_dimension_numbers<[1], [0], [0], [1], [0, 0, 1, 1], [], []>} : vector<8x8xbf16>, vector<8x32xbf16>, vector<8x32xf32> -> vector<8x32xf32>
    %138 = arith.addf %117, %137 : vector<8x32xf32>
    %139 = arith.addf %26, %138 : vector<8x32xf32>
    %140 = vector.shape_cast %20 : vector<32xf32> to vector<1x32xf32>
    %141 = vector.broadcast %140 : vector<1x32xf32> to vector<8x32xf32>
    %142 = arith.addf %139, %141 : vector<8x32xf32>
    %cst_63 = arith.constant dense<0.000000e+00> : vector<8xf32>
    %143 = vector.multi_reduction <add>, %142, %cst_63 [1] : vector<8x32xf32> to vector<8xf32>
    %144 = vector.shape_cast %143 : vector<8xf32> to vector<8x1xf32>
    %cst_64 = arith.constant 3.200000e+01 : f32
    %145 = vector.broadcast %cst_64 : f32 to vector<8x1xf32>
    %146 = arith.divf %144, %145 : vector<8x1xf32>
    %147 = vector.broadcast %146 : vector<8x1xf32> to vector<8x32xf32>
    %148 = arith.subf %142, %147 : vector<8x32xf32>
    %149 = arith.mulf %148, %148 : vector<8x32xf32>
    %cst_65 = arith.constant dense<0.000000e+00> : vector<8xf32>
    %150 = vector.multi_reduction <add>, %149, %cst_65 [1] : vector<8x32xf32> to vector<8xf32>
    %151 = vector.shape_cast %150 : vector<8xf32> to vector<8x1xf32>
    %cst_66 = arith.constant 3.200000e+01 : f32
    %152 = vector.broadcast %cst_66 : f32 to vector<8x1xf32>
    %153 = arith.divf %151, %152 : vector<8x1xf32>
    %154 = vector.broadcast %146 : vector<8x1xf32> to vector<8x32xf32>
    %155 = arith.subf %142, %154 : vector<8x32xf32>
    %cst_67 = arith.constant 9.99999974E-6 : f32
    %156 = vector.broadcast %cst_67 : f32 to vector<8x1xf32>
    %157 = arith.addf %153, %156 : vector<8x1xf32>
    %158 = math.rsqrt %157 : vector<8x1xf32>
    %159 = vector.broadcast %158 : vector<8x1xf32> to vector<8x32xf32>
    %160 = arith.mulf %155, %159 : vector<8x32xf32>
    %161 = vector.shape_cast %16 : vector<32xf32> to vector<1x32xf32>
    %162 = vector.broadcast %161 : vector<1x32xf32> to vector<8x32xf32>
    %163 = arith.mulf %160, %162 : vector<8x32xf32>
    %164 = vector.shape_cast %18 : vector<32xf32> to vector<1x32xf32>
    %165 = vector.broadcast %164 : vector<1x32xf32> to vector<8x32xf32>
    %166 = arith.addf %163, %165 : vector<8x32xf32>
    %167 = arith.truncf %166 : vector<8x32xf32> to vector<8x32xbf16>
    %cst_68 = arith.constant dense<0.000000e+00> : vector<8x64xf32>
    %168 = tpu.matmul %167, %8, %cst_68 {dimension_numbers = #tpu.dot_dimension_numbers<[1], [0], [0], [1], [0, 0, 1, 1], [], []>} : vector<8x32xbf16>, vector<32x64xbf16>, vector<8x64xf32> -> vector<8x64xf32>
    %169 = vector.shape_cast %22 : vector<64xf32> to vector<1x64xf32>
    %170 = vector.broadcast %169 : vector<1x64xf32> to vector<8x64xf32>
    %171 = arith.addf %168, %170 : vector<8x64xf32>
    %cst_69 = arith.constant 5.000000e-01 : f32
    %172 = vector.broadcast %cst_69 : f32 to vector<8x64xf32>
    %173 = arith.mulf %172, %171 : vector<8x64xf32>
    %cst_70 = arith.constant 0.707106769 : f32
    %174 = vector.broadcast %cst_70 : f32 to vector<8x64xf32>
    %175 = arith.mulf %171, %174 : vector<8x64xf32>
    %176 = math.absf %175 : vector<8x64xf32>
    %cst_71 = arith.constant 0.327591091 : f32
    %177 = vector.broadcast %cst_71 : f32 to vector<8x64xf32>
    %178 = arith.mulf %177, %176 : vector<8x64xf32>
    %cst_72 = arith.constant 1.000000e+00 : f32
    %179 = vector.broadcast %cst_72 : f32 to vector<8x64xf32>
    %180 = arith.addf %179, %178 : vector<8x64xf32>
    %cst_73 = arith.constant 1.000000e+00 : f32
    %181 = vector.broadcast %cst_73 : f32 to vector<8x64xf32>
    %182 = arith.divf %181, %180 : vector<8x64xf32>
    %cst_74 = arith.constant 1.06140542 : f32
    %183 = vector.broadcast %cst_74 : f32 to vector<8x64xf32>
    %184 = arith.mulf %182, %183 : vector<8x64xf32>
    %cst_75 = arith.constant -1.45315206 : f32
    %185 = vector.broadcast %cst_75 : f32 to vector<8x64xf32>
    %186 = arith.addf %185, %184 : vector<8x64xf32>
    %187 = arith.mulf %182, %186 : vector<8x64xf32>
    %cst_76 = arith.constant 1.42141378 : f32
    %188 = vector.broadcast %cst_76 : f32 to vector<8x64xf32>
    %189 = arith.addf %188, %187 : vector<8x64xf32>
    %190 = arith.mulf %182, %189 : vector<8x64xf32>
    %cst_77 = arith.constant -0.284496725 : f32
    %191 = vector.broadcast %cst_77 : f32 to vector<8x64xf32>
    %192 = arith.addf %191, %190 : vector<8x64xf32>
    %193 = arith.mulf %182, %192 : vector<8x64xf32>
    %cst_78 = arith.constant 0.254829586 : f32
    %194 = vector.broadcast %cst_78 : f32 to vector<8x64xf32>
    %195 = arith.addf %194, %193 : vector<8x64xf32>
    %196 = arith.mulf %182, %195 : vector<8x64xf32>
    %cst_79 = arith.constant 0.000000e+00 : f32
    %197 = vector.broadcast %cst_79 : f32 to vector<8x64xf32>
    %198 = arith.subf %197, %176 : vector<8x64xf32>
    %199 = arith.mulf %198, %176 : vector<8x64xf32>
    %200 = math.exp %199 : vector<8x64xf32>
    %201 = arith.mulf %196, %200 : vector<8x64xf32>
    %cst_80 = arith.constant 1.000000e+00 : f32
    %202 = vector.broadcast %cst_80 : f32 to vector<8x64xf32>
    %203 = arith.subf %202, %201 : vector<8x64xf32>
    %cst_81 = arith.constant 0.000000e+00 : f32
    %204 = vector.broadcast %cst_81 : f32 to vector<8x64xf32>
    %205 = arith.cmpf oge, %175, %204 : vector<8x64xf32>
    %cst_82 = arith.constant 0.000000e+00 : f32
    %206 = vector.broadcast %cst_82 : f32 to vector<8x64xf32>
    %207 = arith.subf %206, %203 : vector<8x64xf32>
    %208 = arith.select %205, %203, %207 : vector<8x64xi1>, vector<8x64xf32>
    %cst_83 = arith.constant 1.000000e+00 : f32
    %209 = vector.broadcast %cst_83 : f32 to vector<8x64xf32>
    %210 = arith.addf %209, %208 : vector<8x64xf32>
    %211 = arith.mulf %173, %210 : vector<8x64xf32>
    %212 = arith.truncf %211 : vector<8x64xf32> to vector<8x64xbf16>
    %cst_84 = arith.constant dense<0.000000e+00> : vector<8x32xf32>
    %213 = tpu.matmul %212, %10, %cst_84 {dimension_numbers = #tpu.dot_dimension_numbers<[1], [0], [0], [1], [0, 0, 1, 1], [], []>} : vector<8x64xbf16>, vector<64x32xbf16>, vector<8x32xf32> -> vector<8x32xf32>
    %214 = arith.addf %142, %213 : vector<8x32xf32>
    %215 = vector.shape_cast %24 : vector<32xf32> to vector<1x32xf32>
    %216 = vector.broadcast %215 : vector<1x32xf32> to vector<8x32xf32>
    %217 = arith.addf %214, %216 : vector<8x32xf32>
    %c0_85 = arith.constant 0 : index
    %c0_86 = arith.constant 0 : index
    %c0_87 = arith.constant 0 : index
    %218 = vector.load %arg17[%c0_85, %c0_86, %c0_87] : memref<1x8x32xf32, #tpu.memory_space<vmem>>, vector<1x8x32xf32>
    %219 = vector.shape_cast %218 : vector<1x8x32xf32> to vector<8x32xf32>
    %220 = vector.shape_cast %217 : vector<8x32xf32> to vector<1x8x32xf32>
    tpu.vector_store %arg17[%c0_85, %c0_86, %c0_87], %220 {strides = array<i32>} : memref<1x8x32xf32, #tpu.memory_space<vmem>>, vector<1x8x32xf32>,
    %c1_i32 = arith.constant 1 : i32
    %221 = arith.cmpi eq, %arg1, %c1_i32 : i32
    %222 = arith.extui %221 : i1 to i32
    %c0_i32_88 = arith.constant 0 : i32
    %223 = arith.cmpi ne, %222, %c0_i32_88 : i32
    scf.if %223 {
      %c0_89 = arith.constant 0 : index
      %c0_90 = arith.constant 0 : index
      %224 = vector.load %arg14[%c0_89, %c0_90] : memref<1x32xf32, #tpu.memory_space<vmem>>, vector<1x32xf32>
      %225 = vector.shape_cast %224 : vector<1x32xf32> to vector<32xf32>
      %c0_91 = arith.constant 0 : index
      %c0_92 = arith.constant 0 : index
      %226 = vector.load %arg15[%c0_91, %c0_92] : memref<1x32xf32, #tpu.memory_space<vmem>>, vector<1x32xf32>
      %227 = vector.shape_cast %226 : vector<1x32xf32> to vector<32xf32>
      %cst_93 = arith.constant dense<0.000000e+00> : vector<8xf32>
      %228 = vector.multi_reduction <add>, %217, %cst_93 [1] : vector<8x32xf32> to vector<8xf32>
      %229 = vector.shape_cast %228 : vector<8xf32> to vector<8x1xf32>
      %cst_94 = arith.constant 3.200000e+01 : f32
      %230 = vector.broadcast %cst_94 : f32 to vector<8x1xf32>
      %231 = arith.divf %229, %230 : vector<8x1xf32>
      %232 = vector.broadcast %231 : vector<8x1xf32> to vector<8x32xf32>
      %233 = arith.subf %217, %232 : vector<8x32xf32>
      %234 = arith.mulf %233, %233 : vector<8x32xf32>
      %cst_95 = arith.constant dense<0.000000e+00> : vector<8xf32>
      %235 = vector.multi_reduction <add>, %234, %cst_95 [1] : vector<8x32xf32> to vector<8xf32>
      %236 = vector.shape_cast %235 : vector<8xf32> to vector<8x1xf32>
      %cst_96 = arith.constant 3.200000e+01 : f32
      %237 = vector.broadcast %cst_96 : f32 to vector<8x1xf32>
      %238 = arith.divf %236, %237 : vector<8x1xf32>
      %239 = vector.broadcast %231 : vector<8x1xf32> to vector<8x32xf32>
      %240 = arith.subf %217, %239 : vector<8x32xf32>
      %cst_97 = arith.constant 9.99999974E-6 : f32
      %241 = vector.broadcast %cst_97 : f32 to vector<8x1xf32>
      %242 = arith.addf %238, %241 : vector<8x1xf32>
      %243 = math.rsqrt %242 : vector<8x1xf32>
      %244 = vector.broadcast %243 : vector<8x1xf32> to vector<8x32xf32>
      %245 = arith.mulf %240, %244 : vector<8x32xf32>
      %246 = vector.shape_cast %225 : vector<32xf32> to vector<1x32xf32>
      %247 = vector.broadcast %246 : vector<1x32xf32> to vector<8x32xf32>
      %248 = arith.mulf %245, %247 : vector<8x32xf32>
      %249 = vector.shape_cast %227 : vector<32xf32> to vector<1x32xf32>
      %250 = vector.broadcast %249 : vector<1x32xf32> to vector<8x32xf32>
      %251 = arith.addf %248, %250 : vector<8x32xf32>
      %c0_98 = arith.constant 0 : index
      %c0_99 = arith.constant 0 : index
      %c0_100 = arith.constant 0 : index
      %252 = vector.load %arg16[%c0_98, %c0_99, %c0_100] : memref<1x8x32xf32, #tpu.memory_space<vmem>>, vector<1x8x32xf32>
      %253 = vector.shape_cast %252 : vector<1x8x32xf32> to vector<8x32xf32>
      %254 = vector.shape_cast %251 : vector<8x32xf32> to vector<1x8x32xf32>
      tpu.vector_store %arg16[%c0_98, %c0_99, %c0_100], %254 {strides = array<i32>} : memref<1x8x32xf32, #tpu.memory_space<vmem>>, vector<1x8x32xf32>,
    } else {
    }
    return
  }
  func.func @transform_0(%arg0: i32, %arg1: i32) -> (i32, i32, i32) {
    %c0_i32 = arith.constant 0 : i32
    %c0_i32_0 = arith.constant 0 : i32
    %c0_i32_1 = arith.constant 0 : i32
    return %arg0, %c0_i32, %c0_i32_0 : i32, i32, i32
  }
  func.func @transform_1(%arg0: i32, %arg1: i32) -> (i32, i32, i32) {
    %c0_i32 = arith.constant 0 : i32
    %c0_i32_0 = arith.constant 0 : i32
    %c0_i32_1 = arith.constant 0 : i32
    return %arg1, %c0_i32, %c0_i32_0 : i32, i32, i32
  }
  func.func @transform_2(%arg0: i32, %arg1: i32) -> (i32, i32, i32) {
    %c0_i32 = arith.constant 0 : i32
    %c0_i32_0 = arith.constant 0 : i32
    %c0_i32_1 = arith.constant 0 : i32
    return %arg1, %c0_i32, %c0_i32_0 : i32, i32, i32
  }
  func.func @transform_3(%arg0: i32, %arg1: i32) -> (i32, i32, i32) {
    %c0_i32 = arith.constant 0 : i32
    %c0_i32_0 = arith.constant 0 : i32
    %c0_i32_1 = arith.constant 0 : i32
    return %arg1, %c0_i32, %c0_i32_0 : i32, i32, i32
  }
  func.func @transform_4(%arg0: i32, %arg1: i32) -> (i32, i32, i32, i32) {
    %c0_i32 = arith.constant 0 : i32
    %c0_i32_0 = arith.constant 0 : i32
    %c0_i32_1 = arith.constant 0 : i32
    %c0_i32_2 = arith.constant 0 : i32
    return %arg1, %c0_i32, %c0_i32_0, %c0_i32_1 : i32, i32, i32, i32
  }
  func.func @transform_5(%arg0: i32, %arg1: i32) -> (i32, i32, i32) {
    %c0_i32 = arith.constant 0 : i32
    %c0_i32_0 = arith.constant 0 : i32
    %c0_i32_1 = arith.constant 0 : i32
    return %arg1, %c0_i32, %c0_i32_0 : i32, i32, i32
  }
  func.func @transform_6(%arg0: i32, %arg1: i32) -> (i32, i32, i32) {
    %c0_i32 = arith.constant 0 : i32
    %c0_i32_0 = arith.constant 0 : i32
    %c0_i32_1 = arith.constant 0 : i32
    return %arg1, %c0_i32, %c0_i32_0 : i32, i32, i32
  }
  func.func @transform_7(%arg0: i32, %arg1: i32) -> (i32, i32, i32) {
    %c0_i32 = arith.constant 0 : i32
    %c0_i32_0 = arith.constant 0 : i32
    %c0_i32_1 = arith.constant 0 : i32
    return %arg1, %c0_i32, %c0_i32_0 : i32, i32, i32
  }
  func.func @transform_8(%arg0: i32, %arg1: i32) -> (i32, i32, i32) {
    %c0_i32 = arith.constant 0 : i32
    %c0_i32_0 = arith.constant 0 : i32
    %c0_i32_1 = arith.constant 0 : i32
    return %arg1, %c0_i32, %c0_i32_0 : i32, i32, i32
  }
  func.func @transform_9(%arg0: i32, %arg1: i32) -> (i32, i32, i32) {
    %c0_i32 = arith.constant 0 : i32
    %c0_i32_0 = arith.constant 0 : i32
    %c0_i32_1 = arith.constant 0 : i32
    return %arg1, %c0_i32, %c0_i32_0 : i32, i32, i32
  }
  func.func @transform_10(%arg0: i32, %arg1: i32) -> (i32, i32, i32) {
    %c0_i32 = arith.constant 0 : i32
    %c0_i32_0 = arith.constant 0 : i32
    %c0_i32_1 = arith.constant 0 : i32
    return %arg1, %c0_i32, %c0_i32_0 : i32, i32, i32
  }
  func.func @transform_11(%arg0: i32, %arg1: i32) -> (i32, i32, i32) {
    %c0_i32 = arith.constant 0 : i32
    %c0_i32_0 = arith.constant 0 : i32
    %c0_i32_1 = arith.constant 0 : i32
    return %arg1, %c0_i32, %c0_i32_0 : i32, i32, i32
  }
  func.func @transform_12(%arg0: i32, %arg1: i32) -> (i32, i32) {
    %c0_i32 = arith.constant 0 : i32
    %c0_i32_0 = arith.constant 0 : i32
    %c0_i32_1 = arith.constant 0 : i32
    return %c0_i32, %c0_i32_0 : i32, i32
  }
  func.func @transform_13(%arg0: i32, %arg1: i32) -> (i32, i32) {
    %c0_i32 = arith.constant 0 : i32
    %c0_i32_0 = arith.constant 0 : i32
    %c0_i32_1 = arith.constant 0 : i32
    return %c0_i32, %c0_i32_0 : i32, i32
  }
  func.func @transform_14(%arg0: i32, %arg1: i32) -> (i32, i32, i32) {
    %c0_i32 = arith.constant 0 : i32
    %c0_i32_0 = arith.constant 0 : i32
    %c0_i32_1 = arith.constant 0 : i32
    return %arg0, %c0_i32, %c0_i32_0 : i32, i32, i32
  }
}

</mosaic_0001>

<bundles_post_ra>
// kernel: transformer_forward.1
= control target key start
LH: loop header
LB: loop body
LE: loop exit
PB: predicated region body
PF: predicated region fallthrough
CT: control target
= control target key end

     0   :  { %s3333_s0 = inlined_call_operand.hbm [shape: f32[2,8,32], index: 0, kind: input, shape index: {}]   ;;  %s3334_s1 = inlined_call_operand.vmem [shape: f32[2,1,32], index: 1, kind: input, shape index: {}]   ;;  %s3335_s2 = inlined_call_operand.hbm [shape: f32[2,1,32], index: 2, kind: input, shape index: {}]   ;;  %s3336_s3 = inlined_call_operand.vmem [shape: bf16[2,32,96], index: 3, kind: input, shape index: {}]   ;;  %s3337_s4 = inlined_call_operand.vmem [shape: bf16[2,4,8,32], index: 4, kind: input, shape index: {}]   ;;  %s3338_s5 = inlined_call_operand.vmem [shape: f32[2,1,32], index: 5, kind: input, shape index: {}]   ;;  %s3339_s6 = inlined_call_operand.vmem [shape: f32[2,1,32], index: 6, kind: input, shape index: {}]   ;;  %s3340_s7 = inlined_call_operand.vmem [shape: f32[2,1,32], index: 7, kind: input, shape index: {}]   ;;  %s3341_s8 = inlined_call_operand.vmem [shape: bf16[2,32,64], index: 8, kind: input, shape index: {}]   ;;  %s3342_s9 = inlined_call_operand.hbm [shape: f32[2,1,64], index: 9, kind: input, shape index: {}]   ;;  %s3343_s10 = inlined_call_operand.vmem [shape: bf16[2,64,32], index: 10, kind: input, shape index: {}]   ;;  %s3344_s11 = inlined_call_operand.hbm [shape: f32[2,1,32], index: 11, kind: input, shape index: {}]   ;;  %s3345_s12 = inlined_call_operand.vmem [shape: f32[1,32], index: 12, kind: input, shape index: {}]   ;;  %s3346_s13 = inlined_call_operand.hbm [shape: f32[1,32], index: 13, kind: input, shape index: {}]   ;;  %s3347_s14 = inlined_call_operand.hbm [shape: f32[2,8,32], index: 14, kind: output, shape index: {}]  }
   0x1   :  { %3370 = sst [smem:[#allocation31_spill]] %s3333_s0 }
   0x2   :  { %3371 = sst [smem:[#allocation32_spill]] %s3334_s1 }
   0x3   :  { %3372 = sst [smem:[#allocation33_spill]] %s3335_s2 }
   0x4   :  { %3373 = sst [smem:[#allocation34_spill]] %s3336_s3 }
   0x5   :  { %3374 = sst [smem:[#allocation35_spill]] %s3337_s4 }
   0x6   :  { %3375 = sst [smem:[#allocation36_spill]] %s3338_s5 }
   0x7   :  { %3376 = sst [smem:[#allocation37_spill]] %s3339_s6 }
   0x8   :  { %3377 = sst [smem:[#allocation38_spill]] %s3340_s7 }
   0x9   :  { %3378 = sst [smem:[#allocation39_spill]] %s3341_s8 }
   0xa   :  { %3379 = sst [smem:[#allocation40_spill]] %s3342_s9 }
   0xb   :  { %3380 = sst [smem:[#allocation41_spill]] %s3343_s10 }
   0xc   :  { %3381 = sst [smem:[#allocation42_spill]] %s3344_s11 }
   0xd   :  { %3382 = sst [smem:[#allocation43_spill]] %s3345_s12 }
   0xe   :  { %3383 = sst [smem:[#allocation44_spill]] %s3346_s13 }
   0xf   :  { %3384 = sst [smem:[#allocation45_spill]] %s3347_s14 }
  0x10   :  { %19 = vsyncpa [#allocation4], 0 }
  0x11   :  { %21 = vsyncpa [#allocation4 + $0x1], 0 }
  0x12   :  { %22 = vsyncpa [#allocation7], 0 }
  0x13   :  { %24 = vsyncpa [#allocation7 + $0x1], 0 }
  0x14   :  { %25 = vsyncpa [#allocation10], 0 }
  0x15   :  { %27 = vsyncpa [#allocation10 + $0x1], 0 }
  0x16   :  { %28 = vsyncpa [#allocation5], 0 }
  0x17   :  { %30 = vsyncpa [#allocation5 + $0x1], 0  ;;  %s2728_s29 = smov 0   ;;  %s2730_s30 = smov 0  }
  0x18   :  { %s2732_s15 = smov 0   ;;  %s2734_s16 = smov 0  }
  0x19   :  { %s2736_s17 = smov 0   ;;  %s2738_s18 = smov 0  }
  0x1a   :  { %s2740_s19 = smov 0   ;;  %s2742_s20 = smov 0  }
  0x1b   :  { %s2744_s21 = smov 0   ;;  %s2746_s22 = smov 0  }
  0x1c   :  { %s2748_s23 = smov 0  }
  0x1d LB: > { %3385 = sst [smem:[#allocation18_spill]] %s2596_s30  ;;  %s2782_s24 = sadd.s32 4294967295, %s2632_s23   ;;  %s2632_s23 = sphi %s2748_s23, %s36_s23   ;;  %s2628_s22 = sphi %s2746_s22, %s3460_s22   ;;  %s2624_s21 = sphi %s2744_s21, %s3459_s21   ;;  %s2620_s20 = sphi %s2742_s20, %s3458_s20   ;;  %s2616_s19 = sphi %s2740_s19, %s3457_s19   ;;  %s2612_s18 = sphi %s2738_s18, %s3456_s18   ;;  %s2608_s17 = sphi %s2736_s17, %s3455_s17   ;;  %s2604_s16 = sphi %s2734_s16, %s3454_s16   ;;  %s2600_s15 = sphi %s2732_s15, %s3453_s15   ;;  %s2596_s30 = sphi %s2730_s30, %s3452_s30   ;;  %s2592_s29 = sphi %s2728_s29, %s3451_s29  }
  0x1e   : > { %3386 = sst [smem:[#allocation19_spill]] %s2600_s15  ;;  %s1977_s25 = sadd.s32 4294967294, %s2632_s23  }
  0x1f   : > { %3387 = sst [smem:[#allocation20_spill]] %s2604_s16  ;;  %p68_p0 = scmp.ne.s32.totalorder %s2608_s17, %s2604_s16 }
  0x20   : > { %3388 = sst [smem:[#allocation21_spill]] %s2608_s17  ;;  %p3351_p1 = scmp.eq.s32.totalorder %s2782_s24, 0 }
  0x21   : > { %3389 = sst [smem:[#allocation22_spill]] %s2612_s18  ;;  %p120_p2 = scmp.ne.s32.totalorder %s2596_s30, %s2592_s29 }
  0x22   : > { %3390 = sst [smem:[#allocation23_spill]] %s2620_s20  ;;  %p2792_p4 = por %p3351_p1, %p68_p0 }
  0x23   : > { %3391 = sst [smem:[#allocation24_spill]] %s2624_s21  ;;  %p426_p5 = scmp.eq.s32.totalorder %s1977_s25, 3 }
  0x24   : > { %3392 = sst [smem:[#allocation25_spill]] %s2628_s22  ;;  %p2798_p6 = por %p120_p2, %p3351_p1 }
  0x25   : > { %s3393_s26 = scalar_select %p2792_p4, 1, 0 }
  0x26   : > { %s3394_s27 = scalar_select %p2798_p6, 1, 0 }
  0x27   : > { %p1978_p7 = scmp.ge.s32.totalorder %s2632_s23, 1  ;;  %p2803_p8 = por %p426_p5, %p68_p0 }
  0x28   : > { %p433_p9 = scmp.lt.s32.totalorder %s2632_s23, 5  ;;  %s2634_s16 = smov [#allocation11]  }
  0x29   : > { %s3395_s28 = scalar_select %p2803_p8, 1, 0 }
  0x2a   : > { %p2808_p10 = pnand %p1978_p7, %p433_p9  ;;  %s449_s14 = sshll.u32 %s2634_s16, 4  ;;  %s450_s14 = int_to_ptr.vmem [resolvable:$true] %s449_s14 }
  0x2b   : > { %3396 = sst [smem:[#allocation26_spill]] %s3395_s28  ;;  %s45_s20 = sadd.s32 1, %s2624_s21 }
  0x2c   : > { %s3397_s29 = scalar_select %p2808_p10, 1, 0 }
  0x2d   : > { %p2189_p11 = pneg %p2808_p10  ;;  %p2822_p0 = scmp.ge.s32.totalorder %s45_s20, 2 }
  0x2e   : > { %s3400_s13 = sld [smem:[#allocation44_spill]] }
  0x2f   : > { %p2816_p12 = pnand %p2189_p11, %p3351_p1 }
  0x30   : > { %s3399_s28 = scalar_select %p2822_p0, 1, 0 }
  0x31   : > { %p2352_p5 = pneg %p2816_p12 }
  0x34   : > { %s2350_s8 = scalar_lea.hbm %s3400_s13, 16 }
  0x35   : > { %p2351_p2 = scmp.ne.s32.totalorder %s3400_s13, %s2350_s8  ;;  %p2357_p11 = scmp.lt.u32.totalorder %s2350_s8, %s3400_s13 }
  0x37   : > { %p2353_p7 = pnand %p2352_p5, %p2351_p2 }
  0x39   : > { %p2354_p9 = pneg %p2353_p7 }
  0x3b   : > { %p2359_p1 = pnand %p2357_p11, %p2354_p9 }
  0x3d   : > { %2362 = shalt.err (!%p2359_p1)
}
  0x3e   : > { %s2363_s4 = scalar_lea.vmem %s450_s14, 16  ;;  %s2370_s10 = scalar_lea.vmem %s450_s14, 32 }
  0x3f   : > { %p2364_p3 = scmp.ne.s32.totalorder %s450_s14, %s2363_s4  ;;  %p2371_p6 = scmp.lt.s32.totalorder %s450_s14, %s450_s14 }
  0x40   : > { %p2372_p4 = scmp.lt.s32.totalorder %s2370_s10, %s2363_s4 }
  0x41   : > { %p2366_p13 = pnand %p2364_p3, %p2352_p5 }
  0x42   : > { %p2373_p10 = por %p2372_p4, %p2371_p6 }
  0x43   : > { %p2367_p8 = pneg %p2366_p13 }
  0x45   : > { %p2374_p0 = pnand %p2373_p10, %p2367_p8 }
  0x47   : > { %2377 = shalt.err (!%p2374_p0)
}
  0x48   : > { %2192 = dma.hbm_to_vmem [thread:$0]  (!%p2816_p12), %s3400_s13, 16, %s450_s14, [#allocation10]  }
  0x49   : > { %p3401_p1 = scmp.ne.s32.totalorder %s3399_s28, 0  ;;  %s107_s4 = sadd.s32 1, %s2600_s15 }
  0x4a   : > { %p114_p3 = scmp.ne.s32.totalorder %s2600_s15, %s2596_s30  ;;  %p3360_p4 = scmp.lt.s32.totalorder %s2632_s23, 4 }
  0x4b   : > { %s3462_s20 = smov (%p3401_p1, %s45_s20), 0  ;;  %p3403_p8 = scmp.eq.s32.totalorder %s2632_s23, 0 }
  0x4c   : > { %3402 = sst [smem:[#allocation27_spill]] %s3462_s20  ;;  %s104_s5 = ssub.s32 %s2624_s21, %s3462_s20 }
  0x4d   : > { %p105_p6 = scmp.eq.s32.totalorder %s104_s5, 0  ;;  %p116_p10 = por %p114_p3, %p3403_p8 }
  0x4e   : > { %s3359_s6 = sand.u32 1, %s2632_s23   ;;  %s2856_s8 = sand.u32 1, %s2600_s15  }
  0x4f   : > { %s2859_s25 = scalar_select %p105_p6, %s2600_s15, %s107_s4  }
  0x50   : > { %s2862_s14 = sshll.u32 %s2624_s21, 4  ;;  %s487_s16 = scalar_lea.vmem [#allocation6], %s2856_s8 }
  0x51   : > { %3404 = sst [smem:[#allocation28_spill]] %s2859_s25  ;;  %s494_s10 = sshll.u32 %s487_s16, 4  ;;  %s2871_s10 = int_to_ptr.vmem [resolvable:$true] %s494_s10 }
  0x52   : > { %s3405_s2 = sld [smem:[#allocation33_spill]]  ;;  %p2875_p12 = pnand %p3360_p4, %p116_p10 }
  0x53   : > { %s2881_s5 = scalar_lea.sflag [#allocation7], %s3359_s6 }
  0x54   : > { %s3406_s4 = scalar_select %p2875_p12, 1, 0 }
  0x55   : > { %p2887_p0 = pneg %p2875_p12 }
  0x58   : > { %s2869_s13 = scalar_lea.hbm %s3405_s2, %s2862_s14  ;;  %s2383_s21 = scalar_lea.hbm %s3405_s2, 32 }
  0x59   : > { %s2378_s16 = scalar_lea.hbm %s2869_s13, 16  ;;  %p2384_p7 = scmp.lt.u32.totalorder %s2869_s13, %s3405_s2 }
  0x5a   : > { %p2379_p13 = scmp.ne.s32.totalorder %s2869_s13, %s2378_s16  ;;  %p2385_p9 = scmp.lt.u32.totalorder %s2383_s21, %s2378_s16 }
  0x5b   : > { %p2387_p3 = scmp.lt.u32.totalorder %s2378_s16, %s2869_s13 }
  0x5c   : > { %p2381_p2 = pnand %p2887_p0, %p2379_p13  ;;  %p2386_p11 = por %p2385_p9, %p2384_p7 }
  0x5e   : > { %p2382_p5 = pneg %p2381_p2  ;;  %p2388_p6 = por %p2387_p3, %p2386_p11 }
  0x60   : > { %p2389_p8 = pnand %p2388_p6, %p2382_p5 }
  0x62   : > { %2392 = shalt.err (!%p2389_p8)
}
  0x63   : > { %s2393_s6 = scalar_lea.vmem %s2871_s10, 16  ;;  %s2635_s20 = smov [#allocation6]  }
  0x64   : > { %p2394_p10 = scmp.ne.s32.totalorder %s2871_s10, %s2393_s6  ;;  %s2398_s12 = sshll.u32 %s2635_s20, 4  ;;  %s2399_s12 = int_to_ptr.vmem [resolvable:$false] %s2398_s12 }
  0x65   : > { %s2400_s15 = scalar_lea.vmem %s2399_s12, 32  ;;  %p2401_p4 = scmp.lt.s32.totalorder %s2871_s10, %s2399_s12 }
  0x66   : > { %p2396_p13 = pnand %p2394_p10, %p2887_p0  ;;  %p2402_p1 = scmp.lt.s32.totalorder %s2400_s15, %s2393_s6 }
  0x68   : > { %p2397_p2 = pneg %p2396_p13  ;;  %p2403_p7 = por %p2402_p1, %p2401_p4 }
  0x6a   : > { %p2404_p9 = pnand %p2403_p7, %p2397_p2 }
  0x6c   : > { %2407 = shalt.err (!%p2404_p9)
}
  0x6d   : > { %2199 = dma.hbm_to_vmem [thread:$0]  (!%p2875_p12), %s2869_s13, 16, %s2871_s10, %s2881_s5  }
  0x6e   : > { %s48_s21 = sadd.s32 1, %s2628_s22  ;;  %p3408_p1 = scmp.ne.s32.totalorder %s3399_s28, 0 }
  0x6f   : > { %s55_s6 = sadd.s32 1, %s2612_s18  ;;  %p62_p4 = scmp.ne.s32.totalorder %s2612_s18, %s2608_s17 }
  0x70   : > { %s3464_s21 = smov (!%p3408_p1, %s48_s21), %s2628_s22  ;;  %s460_s25 = sand.u32 1, %s2612_s18  }
  0x71   : > { %p50_p5 = scmp.ge.s32.totalorder %s3464_s21, 2  ;;  %p3409_p11 = scmp.eq.s32.totalorder %s2632_s23, 0 }
  0x72   : > { %p3410_p6 = scmp.eq.s32.totalorder %s2782_s24, 3  ;;  %s1981_s13 = sshll.u32 %s460_s25, 3 }
  0x73   : > { %p64_p3 = por %p3409_p11, %p62_p4  ;;  %s3466_s21 = smov (%p50_p5, %s3464_s21), 0 }
  0x74   : > { %p2923_p8 = por %p3410_p6, %p62_p4  ;;  %3412 = sst [smem:[#allocation29_spill]] %s3466_s21 }
  0x75   : > { %s52_s28 = ssub.s32 %s2628_s22, %s3466_s21  ;;  %s1982_s10 = sshll.u32 %s2628_s22, 7 }
  0x76   : > { %s3411_s16 = scalar_select %p2923_p8, 1, 0 }
  0x77   : > { %p53_p10 = scmp.eq.s32.totalorder %s52_s28, 0  ;;  %s3413_s0 = sld [smem:[#allocation31_spill]] }
  0x78   : > { %s464_s2 = scalar_lea.vmem [#allocation3], %s1981_s13  ;;  %p3415_p13 = scmp.lt.s32.totalorder %s2632_s23, 4 }
  0x79   : > { %s471_s3 = sshll.u32 %s464_s2, 4  ;;  %s3417_s9 = sld [smem:[#allocation40_spill]]  ;;  %s2940_s3 = int_to_ptr.vmem [resolvable:$true] %s471_s3 }
  0x7a   : > { %s2938_s1 = scalar_select %p53_p10, %s2612_s18, %s55_s6  }
  0x7b   : > { %p2944_p2 = pnand %p3415_p13, %p64_p3  ;;  %s546_s20 = scalar_lea.vmem [#allocation8], %s2856_s8 }
  0x7c   : > { %3414 = sst [smem:[#allocation30_spill]] %s2938_s1  ;;  %s2955_s13 = sshll.u32 %s546_s20, 4  ;;  %s554_s13 = int_to_ptr.vmem [resolvable:$true] %s2955_s13 }
  0x7d   : > { %s2935_s15 = scalar_lea.hbm %s3413_s0, %s1982_s10  ;;  %s461_s2 = scalar_lea.sflag [#allocation4], %s460_s25 }
  0x7e   : > { %s2408_s6 = scalar_lea.hbm %s2935_s15, 128  ;;  %p2410_p9 = pneg %p2944_p2 }
  0x7f   : > { %s2952_s10 = scalar_lea.hbm %s3417_s9, %s2862_s14  ;;  %p2409_p7 = scmp.ne.s32.totalorder %s2935_s15, %s2408_s6 }
  0x80   : > { %s2413_s22 = scalar_lea.hbm %s3413_s0, 256  ;;  %p2414_p5 = scmp.lt.u32.totalorder %s2935_s15, %s3413_s0 }
  0x81   : > { %p2411_p1 = pnand %p2410_p9, %p2409_p7  ;;  %p2415_p11 = scmp.lt.u32.totalorder %s2413_s22, %s2408_s6 }
  0x82   : > { %p2417_p6 = scmp.lt.u32.totalorder %s2408_s6, %s2935_s15 }
  0x83   : > { %p2412_p4 = pneg %p2411_p1  ;;  %p2416_p3 = por %p2415_p11, %p2414_p5 }
  0x85   : > { %p2418_p10 = por %p2417_p6, %p2416_p3 }
  0x87   : > { %p2419_p13 = pnand %p2418_p10, %p2412_p4 }
  0x89   : > { %2422 = shalt.err (!%p2419_p13)
}
  0x8a   : > { %s2423_s25 = scalar_lea.vmem %s2940_s3, 128  ;;  %s2636_s1 = smov [#allocation3]  }
  0x8b   : > { %p2424_p7 = scmp.ne.s32.totalorder %s2940_s3, %s2423_s25  ;;  %s2428_s20 = sshll.u32 %s2636_s1, 4  ;;  %s2429_s20 = int_to_ptr.vmem [resolvable:$false] %s2428_s20 }
  0x8c   : > { %s2430_s18 = scalar_lea.vmem %s2429_s20, 256  ;;  %p2431_p12 = scmp.lt.s32.totalorder %s2940_s3, %s2429_s20 }
  0x8d   : > { %p2426_p1 = pnand %p2424_p7, %p2410_p9  ;;  %p2432_p5 = scmp.lt.s32.totalorder %s2430_s18, %s2423_s25 }
  0x8f   : > { %p2427_p8 = pneg %p2426_p1  ;;  %p2433_p11 = por %p2432_p5, %p2431_p12 }
  0x91   : > { %p2434_p3 = pnand %p2433_p11, %p2427_p8 }
  0x93   : > { %2437 = shalt.err (!%p2434_p3)
}
  0x94   : > { %2196 = dma.hbm_to_vmem [thread:$0]  (!%p2944_p2), %s2935_s15, 128, %s2940_s3, %s461_s2  }
  0x95   : > { %s2438_s6 = scalar_lea.hbm %s2952_s10, 16  ;;  %s2443_s28 = scalar_lea.hbm %s3417_s9, 32 }
  0x96   : > { %p2439_p9 = scmp.ne.s32.totalorder %s2952_s10, %s2438_s6  ;;  %p2444_p12 = scmp.lt.u32.totalorder %s2952_s10, %s3417_s9 }
  0x97   : > { %p2445_p8 = scmp.lt.u32.totalorder %s2443_s28, %s2438_s6  ;;  %p2447_p13 = scmp.lt.u32.totalorder %s2438_s6, %s2952_s10 }
  0x98   : > { %p2441_p4 = pnand %p2439_p9, %p2887_p0 }
  0x99   : > { %p2446_p10 = por %p2445_p8, %p2444_p12 }
  0x9a   : > { %p2442_p6 = pneg %p2441_p4 }
  0x9b   : > { %p2448_p7 = por %p2447_p13, %p2446_p10 }
  0x9d   : > { %p2449_p1 = pnand %p2448_p7, %p2442_p6 }
  0x9f   : > { %2452 = shalt.err (!%p2449_p1)
}
  0xa0   : > { %s2453_s3 = scalar_lea.vmem %s554_s13, 16  ;;  %s2637_s15 = smov [#allocation8]  }
  0xa1   : > { %p2454_p2 = scmp.ne.s32.totalorder %s554_s13, %s2453_s3  ;;  %s2458_s2 = sshll.u32 %s2637_s15, 4  ;;  %s2459_s2 = int_to_ptr.vmem [resolvable:$false] %s2458_s2 }
  0xa2   : > { %s2460_s1 = scalar_lea.vmem %s2459_s2, 32  ;;  %p2461_p3 = scmp.lt.s32.totalorder %s554_s13, %s2459_s2 }
  0xa3   : > { %p2456_p5 = pnand %p2454_p2, %p2887_p0  ;;  %p2462_p9 = scmp.lt.s32.totalorder %s2460_s1, %s2453_s3 }
  0xa5   : > { %p2457_p11 = pneg %p2456_p5  ;;  %p2463_p4 = por %p2462_p9, %p2461_p3 }
  0xa7   : > { %p2464_p8 = pnand %p2463_p4, %p2457_p11 }
  0xa9   : > { %2467 = shalt.err (!%p2464_p8)
}
  0xaa   : > { %p3418_p12 = scmp.ne.s32.totalorder %s3406_s4, 0  ;;  %s3419_s11 = sld [smem:[#allocation42_spill]] }
  0xab   : > { %s571_s12 = scalar_lea.vmem [#allocation9], %s2856_s8  ;;  %s3420_s28 = sand.u32 1, %s2632_s23  }
  0xac   : > { %2202 = dma.hbm_to_vmem [thread:$0]  (!%p3418_p12), %s2952_s10, 16, %s554_s13, %s2881_s5  }
  0xad   : > { %s578_s22 = sshll.u32 %s571_s12, 4  ;;  %s569_s21 = scalar_lea.sflag [#allocation10], %s3420_s28  ;;  %s579_s22 = int_to_ptr.vmem [resolvable:$true] %s578_s22 }
  0xb0   : > { %s3005_s6 = scalar_lea.hbm %s3419_s11, %s2862_s14  ;;  %s2473_s13 = scalar_lea.hbm %s3419_s11, 32 }
  0xb1   : > { %s2468_s25 = scalar_lea.hbm %s3005_s6, 16  ;;  %p2474_p7 = scmp.lt.u32.totalorder %s3005_s6, %s3419_s11 }
  0xb2   : > { %p2469_p6 = scmp.ne.s32.totalorder %s3005_s6, %s2468_s25  ;;  %p2475_p1 = scmp.lt.u32.totalorder %s2473_s13, %s2468_s25 }
  0xb3   : > { %p2477_p5 = scmp.lt.u32.totalorder %s2468_s25, %s3005_s6 }
  0xb4   : > { %p2471_p10 = pnand %p2469_p6, %p2887_p0  ;;  %p2476_p2 = por %p2475_p1, %p2474_p7 }
  0xb6   : > { %p2472_p13 = pneg %p2471_p10  ;;  %p2478_p11 = por %p2477_p5, %p2476_p2 }
  0xb8   : > { %p2479_p3 = pnand %p2478_p11, %p2472_p13 }
  0xba   : > { %2482 = shalt.err (!%p2479_p3)
}
  0xbb   : > { %s2483_s8 = scalar_lea.vmem %s579_s22, 16  ;;  %s2638_s15 = smov [#allocation9]  }
  0xbc   : > { %p2484_p9 = scmp.ne.s32.totalorder %s579_s22, %s2483_s8  ;;  %s2488_s2 = sshll.u32 %s2638_s15, 4  ;;  %s2489_s2 = int_to_ptr.vmem [resolvable:$false] %s2488_s2 }
  0xbd   : > { %s2490_s1 = scalar_lea.vmem %s2489_s2, 32  ;;  %p2491_p6 = scmp.lt.s32.totalorder %s579_s22, %s2489_s2 }
  0xbe   : > { %p2486_p4 = pnand %p2484_p9, %p2887_p0  ;;  %p2492_p10 = scmp.lt.s32.totalorder %s2490_s1, %s2483_s8 }
  0xc0   : > { %p2487_p8 = pneg %p2486_p4  ;;  %p2493_p12 = por %p2492_p10, %p2491_p6 }
  0xc2   : > { %p2494_p1 = pnand %p2493_p12, %p2487_p8 }
  0xc4   : > { %2497 = shalt.err (!%p2494_p1)
}
  0xc5   : > { %p3421_p7 = scmp.ne.s32.totalorder %s3406_s4, 0  ;;  %p3422_p13 = scmp.ne.s32.totalorder %s3397_s29, 0 }
  0xc6   : > { %s3030_s7 = sand.u32 (!%p3422_p13), 1, %s2608_s17   ;;  %p3423_p0 = scmp.ne.s32.totalorder (!%p3422_p13), %s3393_s26, 0 }
  0xc7   : > { %2205 = dma.hbm_to_vmem [thread:$0]  (!%p3421_p7), %s3005_s6, 16, %s579_s22, %s569_s21  }
  0xc8   : > { %587 = sbr.rel (%p3422_p13) target bundleno = 3813 (0xee5), region = 76  ;;  %s3367_s20 = sshll.u32 (!%p3422_p13), %s3030_s7, 3 }
  0xc9   : > { %s590_s18 = scalar_lea.sflag (!%p3422_p13), [#allocation4], %s3030_s7  ;;  %s3036_s12 = scalar_lea.vmem (!%p3422_p13), [#allocation3], %s3367_s20 }
  0xcf   : > { %2571 = dma.done.wait (%p3423_p0), %s590_s18, 128  }
  0xd0   : > { %2573 = vsyncadd (%p3423_p0), %s590_s18, 4294967168  ;;  %s598_s29 = sand.u32 1, %s2782_s24   ;;  %s3044_s4 = sand.u32 1, %s2596_s30  }
  0xd1   : > { %s599_s6 = scalar_lea.sflag [#allocation7], %s598_s29  ;;  %p3424_p12 = scmp.ne.s32.totalorder %s3394_s27, 0 }
  0xd3   : > { %2575 = dma.done.wait (%p3424_p12), %s599_s6, 32  }
  0xd4   : > { %2577 = vsyncadd (%p3424_p12), %s599_s6, 4294967264  ;;  %s615_s26 = scalar_lea.sflag [#allocation10], %s598_s29 }
  0xd5   : > { %2579 = dma.done.wait (%p3424_p12), %s615_s26, 16  }
  0xd6   : > { %2581 = vsyncadd (%p3424_p12), %s615_s26, 4294967280  ;;  %p3425_p2 = scmp.eq.s32.totalorder %s2782_s24, 0 }
  0xd8   : > { %2583 = dma.done.wait (%p3425_p2), [#allocation10], 16   ;;  %p3426_p5 = pmov %p3425_p2 }
  0xd9   : > { %p710_p11 = scmp.lt.s32.totalorder %s2616_s19, 1  ;;  %s3428_s8 = sld [smem:[#allocation34_spill]] }
  0xda   : > { %2585 = vsyncadd (%p3426_p5), [#allocation10], 4294967280  ;;  %s3429_s18 = sld [smem:[#allocation35_spill]]  ;;  %s3430_s5 = sld [smem:[#allocation36_spill]] }
  0xdb   : > { %s3063_s25 = scalar_select %p710_p11, %s2616_s19, 1 }
  0xdc   : > { %s3431_s22 = sld [smem:[#allocation37_spill]]  ;;  %s3432_s0 = sld [smem:[#allocation38_spill]] }
  0xdd   : > { %s2036_s14 = sshll.u32 %s3063_s25, 4  ;;  %s2039_s2 = sshll.u32 %s3063_s25, 5 }
  0xde   : > { %s3434_s17 = sld [smem:[#allocation41_spill]]  ;;  %s3435_s6 = sshll.u32 %s3030_s7, 3 }
  0xdf   : > { %s3073_s15 = scalar_lea.vmem %s3428_s8, %s2036_s14  ;;  %s3433_s8 = sld [smem:[#allocation39_spill]] }
  0xe0   : > { %s3078_s29 = scalar_lea.vmem %s3429_s18, %s2036_s14  ;;  %s725_s10 = scalar_lea.vmem %s3430_s5, %s3063_s25 }
  0xe1   : > { %s3105_s26 = scalar_lea.vmem [#allocation12], %s3435_s6  ;;  %p1998_p3 = scmp.ne.s32.totalorder %s2616_s19, 0 }
  0xe2   : > { %s728_s20 = scalar_lea.vmem %s3431_s22, %s3063_s25  ;;  %s731_s9 = scalar_lea.vmem %s3432_s0, %s3063_s25  ;;  %v747_v0 = vld [vmem:[%s3036_s12] sm:$0xff] (!%p1998_p3)  ;;  %vm748_vm0 = vcmask (!%p1998_p3), 261120  }
  0xe3   : > { %746 = sbr.rel (%p1998_p3) target bundleno = 234 (0xea), region = 100  ;;  %749 = vst.msk [vmem:[#allocation2] sm:$0xff] (!%p1998_p3), %vm748_vm0, %v747_v0 }
  0xe4   : > { %s3101_s30 = scalar_lea.vmem %s3434_s17, %s2039_s2 }
  0xe5   : > { %s3095_s11 = scalar_lea.vmem %s3433_s8, %s2036_s14 }
  0xea PF: > { %v3109_v1 = vld [vmem:[#allocation2] sm:$0xff]  ;;  %vm778_vm1 = vcmask 261120   ;;  %v2639_v9 = vmov 0.0   ;;  %vm2640_vm2 = vmmov 0   ;;  %v2317_v10 = vld [vmem:[%s3073_s15 + $0x8] sm:$0xff]   ;;  %s3436_s12 = sld [smem:[#allocation32_spill]] }
  0xeb   : > { %v779_v2 = vsel %vm778_vm1, %v3109_v1, 0.0  ;;  %v2316_v8 = vld [vmem:[%s3073_s15] sm:$0xff]   ;;  %2075 = vmatprep.subr.bf16.mxu1 %v2639_v9  ;;  %2079 = vmatprep.mubr.msk.bf16.mxu1 %vm2640_vm2, %v2639_v9  ;;  %s3438_s28 = scalar_lea.vmem [#allocation6], %s3044_s4  ;;  %s2641_s21 = smov 120   ;;  %vm867_vm3 = vcmask 64512   ;;  %vm930_vm4 = vcmask 1043456  }
  0xec   : > { %780 = vadd.xlane.f32.xlu0 %v779_v2  ;;  %2076 = vmatpush3.bf16.msra.mxu1 %v2316_v8  ;;  %v2000_v17 = vld [vmem:[%s3438_s28] ss:$0 sm:$0xff]  ;;  %s2642_s27 = smov 96   ;;  %s2643_s14 = smov 88   ;;  %v755_v59 = vld [vmem:[%s3078_s29 + $0x4] sm:$0xf] }
  0xed   : > { %2089 = vmatprep.subr.bf16.mxu0 %v2639_v9  ;;  %2077 = vmatprep.subr.bf16.mxu1 %v2639_v9  ;;  %s2644_s15 = smov 64   ;;  %s2645_s5 = smov 56   ;;  %v754_v57 = vld [vmem:[%s3078_s29] sm:$0xf]  ;;  %v1091_v60 = vsel %vm930_vm4, %v755_v59, 0  ;;  %vm1644_vm6 = vcmask 523264  }
  0xee   : > { %2091 = vmatprep.mubr.msk.bf16.mxu0 %vm2640_vm2, %v2639_v9  ;;  %s2646_s13 = smov 80   ;;  %s2647_s3 = smov 112   ;;  %v1137_v58 = vsel %vm930_vm4, %v754_v57, 0 }
  0xef   : > { %s2648_s24 = smov 104   ;;  %s2649_s8 = smov 48  }
  0xf0   : > { %2078 = vmatpush3.bf16.msra.mxu1 %v2317_v10  ;;  %s3437_s22 = scalar_lea.vmem %s3436_s12, %s3063_s25  ;;  %s2650_s2 = smov 72  }
  0xf1   : > { %2083 = vmatprep.subr.bf16.mxu1 %v2639_v9  ;;  %v1999_v15 = vld [vmem:[%s3437_s22] ss:$0 sm:$0xff]  ;;  %s2651_s1 = smov 40   ;;  %p2029_p9 = scmp.ne.s32.totalorder %s2616_s19, 1 }
  0xf2   : > { %s3444_s19 = sld [smem:[#allocation43_spill]] (!%p2029_p9) }
 0x179   : > { %v781_v3 = vpop.xlane.xlu0 %780 }
 0x17a   : > { %v783_v4 = vmul.f32 0.03125, %v781_v3 }
 0x17c   : > { %v784_v5 = vsub.f32 %v3109_v1, %v783_v4 }
 0x17e   : > { %v785_v6 = vmul.f32 %v784_v5, %v784_v5 }
 0x180   : > { %v786_v7 = vsel %vm778_vm1, %v785_v6, 0.0 }
 0x181   : > { %787 = vadd.xlane.f32.xlu0 %v786_v7 }
 0x20e   : > { %v788_v11 = vpop.xlane.xlu0 %787 }
 0x20f   : > { %v789_v12 = vmul.f32 0.03125, %v788_v11 }
 0x211   : > { %v790_v13 = vadd.f32 1e-05, %v789_v12 }
 0x213   : > { %2324 = vrsqrt.f32 %v790_v13 }
 0x21d   : > { %v2325_v14 = vpop.eup %2324 }
 0x21e   : > { %v792_v16 = vmul.f32 %v2325_v14, %v784_v5 }
 0x220   : > { %v799_v18 = vmul.f32 %v1999_v15, %v792_v16 }
 0x222   : > { %v806_v19 = vadd.f32 %v2000_v17, %v799_v18 }
 0x224   : > { %v807_v20 = vpack.c.bf16 %v806_v19, %v806_v19 }
 0x226   : > { %2080 = vmatmul.mubr.msk.bf16.vlgmr.msra.gmra.mrb[0].mxu1 %vm778_vm1, %v807_v20 }
 0x227   : > { %2085 = vmatprep.mubr.msk.bf16.mxu1 %vm2640_vm2, %v2639_v9 }
 0x2f9   : > { %v857_v21 = vpop.f32.mrb[0].mxu1 }
 0x2fa   : > { %v3135_v22 = vpack.c.bf16 %v857_v21, %v857_v21  ;;  %v2081_v23 = vpop.f32.mrb[1].mxu1 }
 0x2fb   : > { %v860_v24 = vpop.f32.mrb[2].mxu1 }
 0x2fc   : > { %976 = vrot.lane.b32.xlu0 %v3135_v22, %s2641_s21  ;;  %865 = vrot.lane.b32.xlu1 %v3135_v22, %s2642_s27  ;;  %v2082_v25 = vpop.f32.mrb[3].mxu1 }
 0x300   : > { %978 = vrot.lane.b32.xlu1 %v3135_v22, %s2643_s14 }
 0x36e   : > { %v866_v26 = vpop.permute.xlu1 %865  ;;  %v977_v30 = vpop.permute.xlu0 %976 }
 0x36f   : > { %v872_v27 = vsel %vm867_vm3, %v866_v26, 0 }
 0x370   : > { %2084 = vmatpush3.bf16.xpose.msra.mxu1 %v872_v27 }
 0x371   : > { %2095 = vmatprep.subr.bf16.mxu1 %v2639_v9 }
 0x372   : > { %v979_v28 = vpop.permute.xlu1 %978 }
 0x373   : > { %v984_v29 = vsel %vm867_vm3, %v979_v28, 0 }
 0x377   : > { %2086 = vmatmul.mubr.msk.bf16.vlgmr.msra.gmra.mrb[4].mxu1 %vm867_vm3, %v3135_v22 }
 0x378   : > { %2096 = vmatpush3.bf16.xpose.msra.mxu1 %v984_v29  ;;  %2097 = vmatprep.mubr.msk.bf16.mxu1 %vm2640_vm2, %v2639_v9 }
 0x379   : > { %2107 = vmatprep.subr.bf16.mxu1 %v2639_v9 }
 0x37f   : > { %2098 = vmatmul.mubr.msk.bf16.vlgmr.msra.gmra.mrb[8].mxu1 %vm867_vm3, %v977_v30 }
 0x380   : > { %2109 = vmatprep.mubr.msk.bf16.mxu1 %vm2640_vm2, %v2639_v9  ;;  %2108 = vmatpush3.bf16.msra.mxu1 %v1091_v60 }
 0x381   : > { %2119 = vmatprep.subr.bf16.mxu1 %v2639_v9 }
 0x44a   : > { %v908_v31 = vpop.f32.mrb[4].mxu1 }
 0x44b   : > { %v2087_v32 = vpop.f32.mrb[5].mxu1  ;;  %v914_v33 = vsel %vm867_vm3, %v908_v31, -inf }
 0x44c   : > { %915 = vmax.xlane.f32.xlu1 %v914_v33  ;;  %v911_v34 = vpop.f32.mrb[6].mxu1 }
 0x44d   : > { %v2088_v35 = vpop.f32.mrb[7].mxu1 }
 0x452   : > { %v1020_v36 = vpop.f32.mrb[8].mxu1 }
 0x453   : > { %v2099_v37 = vpop.f32.mrb[9].mxu1  ;;  %v1026_v38 = vsel %vm867_vm3, %v1020_v36, -inf }
 0x454   : > { %1027 = vmax.xlane.f32.xlu0 %v1026_v38  ;;  %v1023_v39 = vpop.f32.mrb[10].mxu1 }
 0x455   : > { %v2100_v40 = vpop.f32.mrb[11].mxu1 }
 0x45d   : > { %925 = vrot.lane.b32.xlu1 %v3135_v22, %s2644_s15 }
 0x46a   : > { %1037 = vrot.lane.b32.xlu0 %v3135_v22, %s2645_s5 }
 0x46e   : > { %1181 = vrot.lane.b32.xlu0 %v3135_v22, %s2646_s13 }
 0x472   : > { %1179 = vrot.lane.b32.xlu0 %v3135_v22, %s2647_s3 }
 0x4d9   : > { %v916_v41 = vpop.xlane.xlu1 %915 }
 0x4da   : > { %v917_v42 = vsub.f32 %v908_v31, %v916_v41 }
 0x4dc   : > { %v918_v43 = vmul.f32 1.442695, %v917_v42 }
 0x4dd   : > { %v926_v44 = vpop.permute.xlu1 %925 }
 0x4de   : > { %2326 = vpow2.f32 %v918_v43  ;;  %v932_v45 = vsel %vm930_vm4, %v926_v44, 0  ;;  %v756_v44 = vld [vmem:[%s3078_s29 + $0x8] sm:$0xf] }
 0x4df   : > { %2090 = vmatpush3.bf16.msra.mxu0 %v932_v45  ;;  %v1294_v45 = vsel %vm930_vm4, %v756_v44, 0 }
 0x4e0   : > { %2101 = vmatprep.subr.bf16.mxu0 %v2639_v9 }
 0x4e1   : > { %v1028_v46 = vpop.xlane.xlu0 %1027 }
 0x4e2   : > { %v1029_v47 = vsub.f32 %v1020_v36, %v1028_v46 }
 0x4e4   : > { %v1030_v48 = vmul.f32 1.442695, %v1029_v47 }
 0x4e5   : > { %v1038_v50 = vpop.permute.xlu0 %1037 }
 0x4e6   : > { %2328 = vpow2.f32 %v1030_v48  ;;  %v1043_v53 = vsel %vm930_vm4, %v1038_v50, 0 }
 0x4e8   : > { %v2327_v49 = vpop.eup %2326 }
 0x4e9   : > { %v920_v51 = vsel %vm867_vm3, %v2327_v49, 0.0  ;;  %v924_v52 = vpack.c.bf16 %v2327_v49, %v2327_v49  ;;  %v1182_v61 = vpop.permute.xlu0 %1181 }
 0x4ea   : > { %921 = vadd.xlane.f32.xlu0 %v920_v51  ;;  %v1187_v19 = vsel %vm867_vm3, %v1182_v61, 0 }
 0x4eb   : > { %2092 = vmatmul.mubr.msk.bf16.vlgmr.msra.gmra.mrb[0].mxu0 %vm867_vm3, %v924_v52 }
 0x4ec   : > { %2102 = vmatpush3.bf16.msra.mxu0 %v1043_v53  ;;  %2103 = vmatprep.mubr.msk.bf16.mxu0 %vm2640_vm2, %v2639_v9 }
 0x4ed   : > { %2113 = vmatprep.subr.bf16.mxu0 %v2639_v9  ;;  %v1180_v62 = vpop.permute.xlu0 %1179 }
 0x4f0   : > { %v2329_v54 = vpop.eup %2328 }
 0x4f1   : > { %v1032_v55 = vsel %vm867_vm3, %v2329_v54, 0.0  ;;  %v1036_v56 = vpack.c.bf16 %v2329_v54, %v2329_v54 }
 0x4f2   : > { %1033 = vadd.xlane.f32.xlu1 %v1032_v55 }
 0x4f3   : > { %2104 = vmatmul.mubr.msk.bf16.vlgmr.msra.gmra.mrb[4].mxu0 %vm867_vm3, %v1036_v56 }
 0x4f4   : > { %2115 = vmatprep.mubr.msk.bf16.mxu0 %vm2640_vm2, %v2639_v9  ;;  %2114 = vmatpush3.bf16.msra.mxu0 %v1137_v58 }
 0x4f5   : > { %2125 = vmatprep.subr.bf16.mxu0 %v2639_v9 }
 0x500   : > { %1337 = vrot.lane.b32.xlu0 %v3135_v22, %s2648_s24 }
 0x503   : > { %1240 = vrot.lane.b32.xlu1 %v3135_v22, %s2649_s8 }
 0x577   : > { %v922_v63 = vpop.xlane.xlu0 %921 }
 0x578   : > { %2330 = vrcp.f32 %v922_v63 }
 0x57b   : > { %v1338_v43 = vpop.permute.xlu0 %1337 }
 0x57f   : > { %v1034_v0 = vpop.xlane.xlu1 %1033 }
 0x580   : > { %2332 = vrcp.f32 %v1034_v0 }
 0x582   : > { %v2331_v2 = vpop.eup %2330 }
 0x583   : > { %v1241_v6 = vpop.permute.xlu1 %1240 }
 0x584   : > { %v1246_v11 = vsel %vm930_vm4, %v1241_v6, 0 }
 0x58a   : > { %v2333_v12 = vpop.eup %2332 }
 0x5be   : > { %v968_v3 = vpop.f32.mrb[0].mxu0 }
 0x5bf   : > { %v974_v4 = vmul.f32 %v2331_v2, %v968_v3  ;;  %v2093_v5 = vpop.f32.mrb[1].mxu0  ;;  %v757_v3 = vld [vmem:[%s3078_s29 + $0xc] sm:$0xf] }
 0x5c0   : > { %v971_v7 = vpop.f32.mrb[2].mxu0 }
 0x5c1   : > { %v975_v8 = vpack.c.bf16 %v974_v4, %v974_v4  ;;  %v2094_v10 = vpop.f32.mrb[3].mxu0  ;;  %v1452_v4 = vsel %vm930_vm4, %v757_v3, 0 }
 0x5c3   : > { %2116 = vmatmul.mubr.msk.bf16.vlgmr.msra.gmra.mrb[8].mxu0 %vm867_vm3, %v975_v8 }
 0x5c4   : > { %2126 = vmatpush3.bf16.msra.mxu0 %v1246_v11  ;;  %2127 = vmatprep.mubr.msk.bf16.mxu0 %vm2640_vm2, %v2639_v9 }
 0x5c5   : > { %2137 = vmatprep.subr.bf16.mxu0 %v2639_v9 }
 0x5c6   : > { %v1079_v13 = vpop.f32.mrb[4].mxu0 }
 0x5c7   : > { %v1085_v14 = vmul.f32 %v2333_v12, %v1079_v13  ;;  %v2105_v15 = vpop.f32.mrb[5].mxu0 }
 0x5c8   : > { %v1082_v16 = vpop.f32.mrb[6].mxu0 }
 0x5c9   : > { %v1086_v17 = vpack.c.bf16 %v1085_v14, %v1085_v14  ;;  %v2106_v18 = vpop.f32.mrb[7].mxu0 }
 0x5cb   : > { %2110 = vmatmul.mubr.msk.bf16.vlgmr.msra.gmra.mrb[12].mxu1 %vm867_vm3, %v1086_v17 }
 0x5cc   : > { %2120 = vmatpush3.bf16.xpose.msra.mxu1 %v1187_v19  ;;  %2121 = vmatprep.mubr.msk.bf16.mxu1 %vm2640_vm2, %v2639_v9 }
 0x5cd   : > { %2131 = vmatprep.subr.bf16.mxu1 %v2639_v9 }
 0x5d3   : > { %2122 = vmatmul.mubr.msk.bf16.vlgmr.msra.gmra.mrb[16].mxu1 %vm867_vm3, %v1180_v62 }
 0x5d4   : > { %2133 = vmatprep.mubr.msk.bf16.mxu1 %vm2640_vm2, %v2639_v9  ;;  %2132 = vmatpush3.bf16.msra.mxu1 %v1294_v45  ;;  %v2320_v45 = vld [vmem:[%s3101_s30] sm:$0xff]  }
 0x5d5   : > { %2143 = vmatprep.subr.bf16.mxu1 %v2639_v9 }
 0x696   : > { %v1173_v20 = vpop.f32.mrb[8].mxu0 }
 0x697   : > { %v2117_v21 = vpop.f32.mrb[9].mxu0 }
 0x698   : > { %v1176_v23 = vpop.f32.mrb[10].mxu0 }
 0x699   : > { %v2118_v24 = vpop.f32.mrb[11].mxu0  ;;  %v2016_v23 = vld [vmem:[%s725_s10] ss:$0 sm:$0xff] }
 0x69e   : > { %v1127_v25 = vpop.f32.mrb[12].mxu1 }
 0x69f   : > { %v3190_v26 = vadd.f32 %v1173_v20, %v1127_v25  ;;  %v2111_v27 = vpop.f32.mrb[13].mxu1 }
 0x6a0   : > { %v1130_v28 = vpop.f32.mrb[14].mxu1 }
 0x6a1   : > { %v2112_v29 = vpop.f32.mrb[15].mxu1 }
 0x6a6   : > { %v1223_v30 = vpop.f32.mrb[16].mxu1 }
 0x6a7   : > { %v2123_v31 = vpop.f32.mrb[17].mxu1  ;;  %v1229_v32 = vsel %vm867_vm3, %v1223_v30, -inf }
 0x6a8   : > { %1230 = vmax.xlane.f32.xlu1 %v1229_v32  ;;  %v1226_v33 = vpop.f32.mrb[18].mxu1 }
 0x6a9   : > { %v2124_v34 = vpop.f32.mrb[19].mxu1 }
 0x6aa   : > { %v2318_v34 = vld [vmem:[%s3095_s11] sm:$0xff]  }
 0x6b9   : > { %1339 = vrot.lane.b32.xlu1 %v3135_v22, %s2650_s2 }
 0x735   : > { %v1231_v35 = vpop.xlane.xlu1 %1230 }
 0x736   : > { %v1232_v36 = vsub.f32 %v1223_v30, %v1231_v35 }
 0x738   : > { %v1233_v37 = vmul.f32 1.442695, %v1232_v36 }
 0x739   : > { %v1340_v39 = vpop.permute.xlu1 %1339 }
 0x73a   : > { %2334 = vpow2.f32 %v1233_v37  ;;  %v1345_v42 = vsel %vm867_vm3, %v1340_v39, 0  ;;  %v2017_v39 = vld [vmem:[%s728_s20] ss:$0 sm:$0xff] }
 0x744   : > { %v2335_v38 = vpop.eup %2334 }
 0x745   : > { %v1235_v40 = vsel %vm867_vm3, %v2335_v38, 0.0  ;;  %v1239_v41 = vpack.c.bf16 %v2335_v38, %v2335_v38 }
 0x746   : > { %1236 = vadd.xlane.f32.xlu1 %v1235_v40 }
 0x747   : > { %2128 = vmatmul.mubr.msk.bf16.vlgmr.msra.gmra.mrb[12].mxu0 %vm867_vm3, %v1239_v41  ;;  %v2018_v41 = vld [vmem:[%s731_s9] ss:$0 sm:$0xff]  ;;  %s3442_s9 = scalar_lea.vmem [#allocation8], %s3044_s4 }
 0x748   : > { %2138 = vmatpush3.bf16.xpose.msra.mxu0 %v1345_v42  ;;  %2139 = vmatprep.mubr.msk.bf16.mxu0 %vm2640_vm2, %v2639_v9 }
 0x749   : > { %2149 = vmatprep.subr.bf16.mxu0 %v2639_v9 }
 0x74f   : > { %2140 = vmatmul.mubr.msk.bf16.vlgmr.msra.gmra.mrb[16].mxu0 %vm867_vm3, %v1338_v43 }
 0x750   : > { %2151 = vmatprep.mubr.msk.bf16.mxu0 %vm2640_vm2, %v2639_v9  ;;  %2150 = vmatpush3.bf16.msra.mxu0 %v1452_v4 }
 0x751   : > { %2163 = vmatprep.subr.bf16.mxu0 %v2639_v9 }
 0x757   : > { %1398 = vrot.lane.b32.xlu1 %v3135_v22, %s2651_s1 }
 0x7d3   : > { %v1237_v46 = vpop.xlane.xlu1 %1236 }
 0x7d4   : > { %2336 = vrcp.f32 %v1237_v46  ;;  %v2321_v46 = vld [vmem:[%s3101_s30 + $0x8] sm:$0xff]  }
 0x7d7   : > { %v1399_v51 = vpop.permute.xlu1 %1398 }
 0x7d8   : > { %v1404_v55 = vsel %vm930_vm4, %v1399_v51, 0 }
 0x7de   : > { %v2337_v47 = vpop.eup %2336 }
 0x81a   : > { %v1282_v48 = vpop.f32.mrb[12].mxu0 }
 0x81b   : > { %v1288_v49 = vmul.f32 %v2337_v47, %v1282_v48  ;;  %v2129_v50 = vpop.f32.mrb[13].mxu0  ;;  %v2322_v47 = vld [vmem:[%s3101_s30 + $0x10] sm:$0xff]   ;;  %v2323_v48 = vld [vmem:[%s3101_s30 + $0x18] sm:$0xff]   ;;  %s3443_s30 = scalar_lea.vmem [#allocation9], %s3044_s4 }
 0x81c   : > { %v1285_v52 = vpop.f32.mrb[14].mxu0 }
 0x81d   : > { %v1289_v53 = vpack.c.bf16 %v1288_v49, %v1288_v49  ;;  %v2130_v54 = vpop.f32.mrb[15].mxu0  ;;  %v2019_v49 = vld [vmem:[%s3442_s9] ss:$0 sm:$0xff] }
 0x81f   : > { %2134 = vmatmul.mubr.msk.bf16.vlgmr.msra.gmra.mrb[20].mxu1 %vm867_vm3, %v1289_v53 }
 0x820   : > { %2144 = vmatpush3.bf16.msra.mxu1 %v1404_v55  ;;  %2145 = vmatprep.mubr.msk.bf16.mxu1 %vm2640_vm2, %v2639_v9 }
 0x821   : > { %2155 = vmatprep.subr.bf16.mxu1 %v2639_v9 }
 0x822   : > { %v1381_v22 = vpop.f32.mrb[16].mxu0 }
 0x823   : > { %v2141_v56 = vpop.f32.mrb[17].mxu0  ;;  %v1387_v57 = vsel %vm867_vm3, %v1381_v22, -inf }
 0x824   : > { %1388 = vmax.xlane.f32.xlu0 %v1387_v57  ;;  %v1384_v58 = vpop.f32.mrb[18].mxu0 }
 0x825   : > { %v2142_v59 = vpop.f32.mrb[19].mxu0 }
 0x8b1   : > { %v1389_v60 = vpop.xlane.xlu0 %1388 }
 0x8b2   : > { %v1390_v61 = vsub.f32 %v1381_v22, %v1389_v60 }
 0x8b4   : > { %v1391_v62 = vmul.f32 1.442695, %v1390_v61 }
 0x8b6   : > { %2338 = vpow2.f32 %v1391_v62 }
 0x8c0   : > { %v2339_v63 = vpop.eup %2338 }
 0x8c1   : > { %v1393_v0 = vsel %vm867_vm3, %v2339_v63, 0.0  ;;  %v1397_v2 = vpack.c.bf16 %v2339_v63, %v2339_v63 }
 0x8c2   : > { %1394 = vadd.xlane.f32.xlu0 %v1393_v0 }
 0x8c3   : > { %2146 = vmatmul.mubr.msk.bf16.vlgmr.msra.gmra.mrb[24].mxu1 %vm867_vm3, %v1397_v2 }
 0x8c4   : > { %2159 = vmatprep.mubr.msk.bf16.mxu1 %vm2640_vm2, %v2639_v9  ;;  %2156 = vmatpush3.bf16.msra.mxu1 %v2318_v34 }
 0x8c5   : > { %2157 = vmatprep.subr.bf16.mxu1 %v2639_v9 }
 0x8f2   : > { %v1330_v5 = vpop.f32.mrb[20].mxu1 }
 0x8f3   : > { %v1336_v6 = vadd.f32 %v1330_v5, %v3190_v26  ;;  %v2135_v7 = vpop.f32.mrb[21].mxu1 }
 0x8f4   : > { %v1333_v8 = vpop.f32.mrb[22].mxu1 }
 0x8f5   : > { %v2136_v10 = vpop.f32.mrb[23].mxu1 }
 0x94f   : > { %v1395_v11 = vpop.xlane.xlu0 %1394 }
 0x950   : > { %2340 = vrcp.f32 %v1395_v11 }
 0x95a   : > { %v2341_v12 = vpop.eup %2340 }
 0x996   : > { %v1440_v13 = vpop.f32.mrb[24].mxu1 }
 0x997   : > { %v1446_v14 = vmul.f32 %v2341_v12, %v1440_v13  ;;  %v2147_v15 = vpop.f32.mrb[25].mxu1 }
 0x998   : > { %v1443_v16 = vpop.f32.mrb[26].mxu1 }
 0x999   : > { %v1447_v17 = vpack.c.bf16 %v1446_v14, %v1446_v14  ;;  %v2148_v18 = vpop.f32.mrb[27].mxu1 }
 0x99b   : > { %2152 = vmatmul.mubr.msk.bf16.vlgmr.msra.gmra.mrb[20].mxu0 %vm867_vm3, %v1447_v17  ;;  %v2028_v17 = vld [vmem:[%s3443_s30] ss:$0 sm:$0xff] }
 0x99c   : > { %2171 = vmatprep.mubr.msk.bf16.mxu0 %vm2640_vm2, %v2639_v9  ;;  %2164 = vmatpush3.bf16.msra.mxu0 %v2320_v45 }
 0x99d   : > { %2165 = vmatprep.subr.bf16.mxu0 %v2639_v9 }
 0x9a0   : > { %2166 = vmatpush3.bf16.msra.mxu0 %v2321_v46 }
 0x9a1   : > { %2167 = vmatprep.subr.bf16.mxu0 %v2639_v9 }
 0x9a4   : > { %2168 = vmatpush3.bf16.msra.mxu0 %v2322_v47 }
 0x9a5   : > { %2169 = vmatprep.subr.bf16.mxu0 %v2639_v9 }
 0x9a8   : > { %2170 = vmatpush3.bf16.msra.mxu0 %v2323_v48 }
 0xa6e   : > { %v1488_v19 = vpop.f32.mrb[20].mxu0 }
 0xa6f   : > { %v1494_v20 = vadd.f32 %v1488_v19, %v1336_v6  ;;  %v2153_v21 = vpop.f32.mrb[21].mxu0 }
 0xa70   : > { %v1491_v24 = vpop.f32.mrb[22].mxu0 }
 0xa71   : > { %v1495_v25 = vadd.f32 %v1494_v20, %v3109_v1  ;;  %v2154_v26 = vpop.f32.mrb[23].mxu0  ;;  %v2319_v1 = vld [vmem:[%s3095_s11 + $0x8] sm:$0xff]  }
 0xa72   : > { %2158 = vmatpush3.bf16.msra.mxu1 %v2319_v1  ;;  %v2030_v1 = vld [vmem:[%s3444_s19] ss:$0 sm:$0xff] (!%p2029_p9) }
 0xa73   : > { %v3230_v27 = vadd.f32 %v2016_v23, %v1495_v25 }
 0xa75   : > { %v1503_v28 = vsel %vm778_vm1, %v3230_v27, 0.0 }
 0xa76   : > { %1504 = vadd.xlane.f32.xlu1 %v1503_v28 }
 0xb03   : > { %v1505_v29 = vpop.xlane.xlu1 %1504 }
 0xb04   : > { %v1506_v30 = vmul.f32 0.03125, %v1505_v29 }
 0xb06   : > { %v1507_v31 = vsub.f32 %v3230_v27, %v1506_v30 }
 0xb08   : > { %v1508_v32 = vmul.f32 %v1507_v31, %v1507_v31 }
 0xb0a   : > { %v1509_v33 = vsel %vm778_vm1, %v1508_v32, 0.0 }
 0xb0b   : > { %1510 = vadd.xlane.f32.xlu0 %v1509_v33 }
 0xb98   : > { %v1511_v35 = vpop.xlane.xlu0 %1510 }
 0xb99   : > { %v1512_v36 = vmul.f32 0.03125, %v1511_v35 }
 0xb9b   : > { %v1513_v37 = vadd.f32 1e-05, %v1512_v36  ;;  %v2031_v36 = vld [vmem:[#allocation11] ss:$0 sm:$0xff] (!%p2029_p9) }
 0xb9d   : > { %2342 = vrsqrt.f32 %v1513_v37 }
 0xba7   : > { %v2343_v38 = vpop.eup %2342 }
 0xba8   : > { %v1515_v40 = vmul.f32 %v2343_v38, %v1507_v31 }
 0xbaa   : > { %v1522_v42 = vmul.f32 %v2017_v39, %v1515_v40 }
 0xbac   : > { %v1529_v43 = vadd.f32 %v2018_v41, %v1522_v42 }
 0xbae   : > { %v1530_v44 = vpack.c.bf16 %v1529_v43, %v1529_v43 }
 0xbb0   : > { %2160 = vmatmul.mubr.msk.bf16.vlgmr.msra.gmra.mrb[28].mxu1 %vm778_vm1, %v1530_v44 }
 0xc83   : > { %v1586_v50 = vpop.f32.mrb[28].mxu1 }
 0xc84   : > { %v1587_v51 = vadd.f32 %v2019_v49, %v1586_v50  ;;  %v2161_v52 = vpop.f32.mrb[29].mxu1 }
 0xc85   : > { %v1589_v53 = vpop.f32.mrb[30].mxu1 }
 0xc86   : > { %v1593_v54 = vmul.f32 0.70710677, %v1587_v51  ;;  %v2162_v55 = vpop.f32.mrb[31].mxu1  ;;  %v1592_v13 = vmul.f32 0.5, %v1587_v51 }
 0xc88   : > { %v1594_v22 = vand.u32 2147483647, %v1593_v54  ;;  %vm1614_vm5 = vcmp.ge.f32.partialorder %v1593_v54, 0.0 }
 0xc8a   : > { %v1595_v56 = vmul.f32 0.3275911, %v1594_v22  ;;  %v1608_v58 = vsub.f32 0.0, %v1594_v22 }
 0xc8c   : > { %v1596_v57 = vadd.f32 1.0, %v1595_v56  ;;  %v1609_v60 = vmul.f32 %v1608_v58, %v1594_v22 }
 0xc8e   : > { %2344 = vrcp.f32 %v1596_v57  ;;  %v1610_v9 = vmul.f32 1.442695, %v1609_v60 }
 0xc90   : > { %2346 = vpow2.f32 %v1610_v9 }
 0xc98   : > { %v2345_v59 = vpop.eup %2344 }
 0xc99   : > { %v1599_v61 = vmul.f32 1.0614054, %v2345_v59 }
 0xc9a   : > { %v2347_v7 = vpop.eup %2346 }
 0xc9b   : > { %v1600_v62 = vadd.f32 -1.4531521, %v1599_v61 }
 0xc9d   : > { %v1601_v63 = vmul.f32 %v2345_v59, %v1600_v62 }
 0xc9f   : > { %v1602_v0 = vadd.f32 1.4214138, %v1601_v63 }
 0xca1   : > { %v1603_v2 = vmul.f32 %v2345_v59, %v1602_v0 }
 0xca3   : > { %v1604_v3 = vadd.f32 -0.28449672, %v1603_v2 }
 0xca5   : > { %v1605_v4 = vmul.f32 %v2345_v59, %v1604_v3 }
 0xca7   : > { %v1606_v5 = vadd.f32 0.2548296, %v1605_v4 }
 0xca9   : > { %v1607_v6 = vmul.f32 %v2345_v59, %v1606_v5 }
 0xcab   : > { %v1612_v8 = vmul.f32 %v2347_v7, %v1607_v6 }
 0xcad   : > { %v1613_v10 = vsub.f32 1.0, %v1612_v8 }
 0xcaf   : > { %v1615_v11 = vsub.f32 0.0, %v1613_v10 }
 0xcb1   : > { %v1616_v12 = vsel %vm1614_vm5, %v1613_v10, %v1615_v11 }
 0xcb2   : > { %v1617_v14 = vadd.f32 1.0, %v1616_v12 }
 0xcb4   : > { %v1618_v15 = vmul.f32 %v1617_v14, %v1592_v13 }
 0xcb6   : > { %v1619_v16 = vpack.c.bf16 %v1618_v15, %v1618_v15 }
 0xcb8   : > { %2172 = vmatmul.mubr.msk.bf16.vlgmr.msra.gmra.mrb[24].mxu0 %vm1644_vm6, %v1619_v16 }
 0xd8a   : > { %1700 = sbr.rel (%p2029_p9) target bundleno = 3786 (0xeca), region = 104 }
 0xd8b   : > { %v1682_v18 = vpop.f32.mrb[24].mxu0 }
 0xd8c   : > { %v1688_v19 = vadd.f32 %v1682_v18, %v3230_v27  ;;  %v2173_v20 = vpop.f32.mrb[25].mxu0 }
 0xd8d   : > { %v1685_v21 = vpop.f32.mrb[26].mxu0 }
 0xd8e   : > { %v1695_v23 = vadd.f32 %v2028_v17, %v1688_v19  ;;  %v2174_v24 = vpop.f32.mrb[27].mxu0 }
 0xd90   : > { %1696 = vst.msk [vmem:[#allocation2] sm:$0xff] %vm778_vm1, %v1695_v23  ;;  %v1703_v25 = vsel (!%p2029_p9), %vm778_vm1, %v1695_v23, 0.0 }
 0xd91   : > { %1704 = vadd.xlane.f32.xlu0 %v1703_v25 }
 0xe1e   : > { %v1705_v26 = vpop.xlane.xlu0 %1704 }
 0xe1f   : > { %v1706_v28 = vmul.f32 0.03125, %v1705_v26 }
 0xe21   : > { %v1707_v29 = vsub.f32 %v1695_v23, %v1706_v28 }
 0xe23   : > { %v1708_v30 = vmul.f32 %v1707_v29, %v1707_v29 }
 0xe25   : > { %v1709_v31 = vsel %vm778_vm1, %v1708_v30, 0.0 }
 0xe26   : > { %1710 = vadd.xlane.f32.xlu0 %v1709_v31 }
 0xeb3   : > { %v1711_v27 = vpop.xlane.xlu0 %1710 }
 0xeb4   : > { %v1712_v32 = vmul.f32 0.03125, %v1711_v27 }
 0xeb6   : > { %v1713_v33 = vadd.f32 1e-05, %v1712_v32 }
 0xeb8   : > { %2348 = vrsqrt.f32 %v1713_v33 }
 0xec2   : > { %v2349_v34 = vpop.eup %2348 }
 0xec3   : > { %v1715_v35 = vmul.f32 %v2349_v34, %v1707_v29 }
 0xec5   : > { %v1722_v37 = vmul.f32 %v2030_v1, %v1715_v35 }
 0xec7   : > { %v1729_v38 = vadd.f32 %v2031_v36, %v1722_v37 }
 0xec9   : > { %1730 = vst.msk [vmem:[%s3105_s26] sm:$0xff] %vm778_vm1, %v1729_v38 }
 0xeca PF: > { %s3445_s25 = sld [smem:[#allocation23_spill]]  ;;  %s3446_s14 = sld [smem:[#allocation45_spill]] }
 0xecb   : > { %s1745_s5 = sshll.u32 %s3105_s26, 4  ;;  %s1732_s13 = scalar_lea.sflag [#allocation5], %s3030_s7  ;;  %s1746_s5 = int_to_ptr.vmem [resolvable:$true] %s1745_s5 }
 0xecc   : > { %s2498_s3 = scalar_lea.vmem %s1746_s5, 128  ;;  %p3447_p8 = scmp.ne.s32.totalorder %s3411_s16, 0 }
 0xecd   : > { %p2499_p4 = scmp.ne.s32.totalorder %s1746_s5, %s2498_s3  ;;  %s2652_s24 = smov [#allocation12]  }
 0xece   : > { %s2502_s8 = sshll.u32 %s2652_s24, 4  ;;  %s2503_s8 = int_to_ptr.vmem [resolvable:$false] %s2502_s8 }
 0xecf   : > { %p2500_p6 = pnand %p2499_p4, %p3447_p8  ;;  %s2504_s2 = scalar_lea.vmem %s2503_s8, 256 }
 0xed0   : > { %s2033_s28 = sshll.u32 %s3445_s25, 7  ;;  %p2505_p1 = scmp.lt.s32.totalorder %s1746_s5, %s2503_s8 }
 0xed1   : > { %s3275_s15 = scalar_lea.hbm %s3446_s14, %s2033_s28  ;;  %p2501_p10 = pneg %p2500_p6 }
 0xed2   : > { %p2506_p7 = scmp.lt.s32.totalorder %s2504_s2, %s2498_s3 }
 0xed4   : > { %p2507_p13 = por %p2506_p7, %p2505_p1 }
 0xed6   : > { %p2508_p0 = pnand %p2507_p13, %p2501_p10 }
 0xed8   : > { %2511 = shalt.err (!%p2508_p0)
}
 0xed9   : > { %s2512_s7 = scalar_lea.hbm %s3275_s15, 128  ;;  %s2516_s29 = scalar_lea.hbm %s3446_s14, 256 }
 0xeda   : > { %p2513_p12 = scmp.ne.s32.totalorder %s3275_s15, %s2512_s7  ;;  %p2517_p11 = scmp.lt.u32.totalorder %s3275_s15, %s3446_s14 }
 0xedb   : > { %p2518_p3 = scmp.lt.u32.totalorder %s2516_s29, %s2512_s7  ;;  %p2520_p4 = scmp.lt.u32.totalorder %s2512_s7, %s3275_s15 }
 0xedc   : > { %p2514_p2 = pnand %p2513_p12, %p3447_p8 }
 0xedd   : > { %p2519_p9 = por %p2518_p3, %p2517_p11 }
 0xede   : > { %p2515_p5 = pneg %p2514_p2 }
 0xedf   : > { %p2521_p6 = por %p2520_p4, %p2519_p9 }
 0xee1   : > { %p2522_p10 = pnand %p2521_p6, %p2515_p5 }
 0xee3   : > { %2525 = shalt.err (!%p2522_p10)
}
 0xee4   : > { %2187 = dma.vmem_to_hbm [thread:$0]  (%p3447_p8), %s1746_s5, 128, %s3275_s15, %s1732_s13  }
 0xee5 PF: > { %s3448_s10 = sld [smem:[#allocation20_spill]]  ;;  %s3449_s0 = sld [smem:[#allocation26_spill]] }
 0xee6   : > { %p2213_p1 = scmp.ge.s32.totalorder %s2632_s23, 2 }
 0xeeb   : > { %s1757_s17 = sand.u32 1, %s3448_s10   ;;  %p3450_p7 = scmp.ne.s32.totalorder %s3449_s0, 0 }
 0xeec   : > { %s1758_s12 = scalar_lea.sflag [#allocation5], %s1757_s17 }
 0xeed   : > { %p2207_p13 = pnand %p2213_p1, %p3450_p7 }
 0xeef   : > { %2587 = dma.done.wait (!%p2207_p13), %s1758_s12, 128  }
 0xef0   : > { %2589 = vsyncadd (!%p2207_p13), %s1758_s12, 4294967168  ;;  %s36_s23 = sadd.s32 1, %s2632_s23   ;;  %s3451_s29 = sld [smem:[#allocation18_spill]] }
 0xef1   : > { %p33_p0 = scmp.ge.s32.totalorder %s36_s23, 6   ;;  %s3452_s30 = sld [smem:[#allocation19_spill]] }
 0xef2   : > { %s3453_s15 = sld [smem:[#allocation28_spill]]  ;;  %s3454_s16 = sld [smem:[#allocation21_spill]] }
 0xef3   : > { %s3455_s17 = sld [smem:[#allocation22_spill]]  ;;  %s3456_s18 = sld [smem:[#allocation30_spill]] }
 0xef4   : > { %s3457_s19 = sld [smem:[#allocation24_spill]]  ;;  %s3458_s20 = sld [smem:[#allocation25_spill]] }
 0xef5   : > { %s3459_s21 = sld [smem:[#allocation27_spill]]  ;;  %s3460_s22 = sld [smem:[#allocation29_spill]] }
 0xef6   :  { %35 = sbr.rel (!%p33_p0) target bundleno = 29 (0x1d), region = 194 }
 0xefd   :  { %1763 = vsyncpa [#allocation4], 1 }
 0xefe   :  { %1765 = vsyncpa [#allocation4 + $0x1], 1 }
 0xeff   :  { %1766 = vsyncpa [#allocation7], 1 }
 0xf00   :  { %1768 = vsyncpa [#allocation7 + $0x1], 1 }
 0xf01   :  { %1769 = vsyncpa [#allocation10], 1 }
 0xf02   :  { %1771 = vsyncpa [#allocation10 + $0x1], 1 }
 0xf03   :  { %1772 = vsyncpa [#allocation5], 1 }
 0xf04   :  { %1774 = vsyncpa [#allocation5 + $0x1], 1 }

</bundles_post_ra>
